<compile_context>
chip_gen: v6e
topology: v6e:2x2x1
jax: 0.10.0
libtpu: 0.0.40
codegen_flags: <defaults>
</compile_context>

<pallas_src>
import jax
import jax.numpy as jnp
from jax.experimental import pallas as pl
from jax.experimental.pallas import tpu as pltpu


def make_lstm_kernel(L, B, T, H):
    """L layers, (padded) batch B, sequence length T, hidden size H."""
    G = 4 * H            # packed per-layer gate width (i,f,g,o)
    S = T + L - 1        # skewed step count (prologue + steady + epilogue)

    def kernel(x_ref, w_in_ref, b_all_ref, w_step_ref, wfc_ref, bfc_ref, out_ref):
        # Hoisted, non-recurrent projection: ONE matmul covers layer-0's input
        # term for every timestep AND bakes every layer's bias into each
        # step's additive gate term (epilogue rows of x are zero -> bias only).
        addend = (
            jnp.dot(x_ref[...], w_in_ref[...], preferred_element_type=jnp.float32)
            + b_all_ref[...]
        )                                                   # (S*B, L*G)

        w_step = w_step_ref[...]                            # (L*H, L*G)

        # Lane mask: True on the g-gate third of each layer's 4H block (plain
        # tanh), False on i/f/o (sigmoid via 0.5*t + 0.5, weights pre-scaled).
        # Built ONCE at full (B, L*G) shape -> no broadcast inside the loop.
        lane = jax.lax.broadcasted_iota(jnp.int32, (B, L * G), 1)
        pos = lane % G
        is_g = (pos >= 2 * H) & (pos < 3 * H)

        zeros = jnp.zeros((B, H), jnp.float32)
        h = [zeros for _ in range(L)]
        c = [zeros for _ in range(L)]

        # Fully unrolled skewed recurrence: at step s, layer l computes its
        # timestep (s - l); it is active iff 0 <= s - l < T.  h/c are carried
        # as values (vregs), never written back to VMEM.
        # Scaling note: if T or H grows, stage `addend` through a VMEM scratch
        # and use lax.fori_loop to bound vreg pressure (no-op at this size).
        for s in range(S):
            hvec = jnp.concatenate(h, axis=1)               # (B, L*H)
            # Single fused MXU pass for ALL layers' gates at this step.
            pre = addend[s * B:(s + 1) * B, :] + jnp.dot(
                hvec, w_step, preferred_element_type=jnp.float32)   # (B, L*G)
            t_full = jnp.tanh(pre)                          # one full-width EUP pass
            act = jnp.where(is_g, t_full, 0.5 * t_full + 0.5)
            for l in range(L):
                if l <= s < T + l:                          # layer l active this step
                    g_l = act[:, l * G:(l + 1) * G]
                    i_g = g_l[:, 0:H]
                    f_g = g_l[:, H:2 * H]
                    g_g = g_l[:, 2 * H:3 * H]
                    o_g = g_l[:, 3 * H:4 * H]
                    c[l] = f_g * c[l] + i_g * g_g
                    h[l] = o_g * jnp.tanh(c[l])

        # Final FC on the last-timestep top-layer hidden state (lane-padded).
        out_ref[...] = (
            jnp.dot(h[L - 1], wfc_ref[...], preferred_element_type=jnp.float32)
            + bfc_ref[...]
        )

    return kernel


def lstm_pallas(tokens, emb_matrix, layer_params, wfc, bfc):
    """tokens: (B, T) int32. layer_params: list of (wih(4,in,H), whh(4,H,H), b(4,1,H)).
    Returns (B, out_dim) float32."""
    x = emb_matrix[tokens]                      # (B, T, E) embedding gather (glue)
    # Dropout(0.5): identity in eval mode.
    B, T, E = x.shape
    H = layer_params[0][1].shape[2]
    O = wfc.shape[1]
    L = len(layer_params)
    G = 4 * H
    S = T + L - 1

    Bp = max(8, ((B + 7) // 8) * 8)             # pad batch to full sublanes
    Op = ((O + 127) // 128) * 128               # pad FC output to full lanes

    # Time-major, batch-padded, flattened input with L-1 extra zero "epilogue"
    # row-blocks so the skewed recurrence reads one addend slice per step.
    x_pad = jnp.zeros((Bp, T, E), jnp.float32).at[:B].set(x.astype(jnp.float32))
    x2d = jnp.zeros((S * Bp, E), jnp.float32).at[:T * Bp].set(
        jnp.transpose(x_pad, (1, 0, 2)).reshape(T * Bp, E))

    def pack_cols(w):                           # (4, in, H) -> (in, 4H), order i,f,g,o
        return jnp.concatenate([w[k] for k in range(4)], axis=1)

    # Pre-scale i/f/o columns by 0.5 so the kernel can use a single full-width
    # tanh:  sigmoid(x) = 0.5 * tanh(0.5 * x) + 0.5.
    blk_scale = jnp.concatenate([jnp.full((H,), 0.5), jnp.full((H,), 0.5),
                                 jnp.ones((H,)), jnp.full((H,), 0.5)])
    col_scale = jnp.tile(blk_scale, L)[None, :]                    # (1, L*G)

    wih0, whh0, _ = layer_params[0]

    # Hoisted input-projection weights: layer-0 W_ih in column block 0 only.
    w_in = jnp.zeros((E, L * G), jnp.float32).at[:, :G].set(pack_cols(wih0))
    w_in = w_in * col_scale

    # All-layer packed bias row (b_ih + b_hh already combined per layer).
    b_all = jnp.concatenate([pack_cols(p[2]) for p in layer_params], axis=1)
    b_all = b_all * col_scale                                      # (1, L*G)

    # Block-structured skewed step weights: column block l = layer l's gates;
    # row block l-1 carries W_ih[l] (input = hidden of the layer below, one
    # skewed step earlier), row block l carries W_hh[l]; layer 0 only has its
    # recurrent block (its input term lives in the hoisted projection).
    w_step = jnp.zeros((L * H, L * G), jnp.float32)
    w_step = w_step.at[0:H, 0:G].set(pack_cols(whh0))
    for l in range(1, L):
        wih_l, whh_l, _ = layer_params[l]
        w_step = w_step.at[(l - 1) * H:l * H, l * G:(l + 1) * G].set(pack_cols(wih_l))
        w_step = w_step.at[l * H:(l + 1) * H, l * G:(l + 1) * G].set(pack_cols(whh_l))
    w_step = w_step * col_scale

    wfc_p = jnp.zeros((H, Op), jnp.float32).at[:, :O].set(wfc)
    bfc_p = jnp.zeros((1, Op), jnp.float32).at[:, :O].set(bfc)

    operands = [x2d, w_in, b_all, w_step, wfc_p, bfc_p]
    in_specs = [pl.BlockSpec(op.shape, lambda i: (0, 0)) for op in operands]

    kernel = make_lstm_kernel(L, Bp, T, H)

    out = pl.pallas_call(
        kernel,
        out_shape=jax.ShapeDtypeStruct((Bp, Op), jnp.float32),
        grid_spec=pltpu.PrefetchScalarGridSpec(
            num_scalar_prefetch=0,
            grid=(1,),                          # single invocation; skewed loop in-kernel
            in_specs=in_specs,
            out_specs=pl.BlockSpec((Bp, Op), lambda i: (0, 0)),
        ),
        compiler_params=pltpu.CompilerParams(
            dimension_semantics=("arbitrary",),
        ),
    )(*operands)
    return out[:B, :O]


def lstm_ref(tokens, emb_matrix, layer_params, wfc, bfc):
    """Pure-JAX reference matching PyTorch nn.LSTM (gate order i,f,g,o)."""
    x = emb_matrix[tokens]
    B, T, _ = x.shape
    H = layer_params[0][1].shape[2]
    L = len(layer_params)
    h = [jnp.zeros((B, H), jnp.float32) for _ in range(L)]
    c = [jnp.zeros((B, H), jnp.float32) for _ in range(L)]
    inp = None
    for t in range(T):
        inp = x[:, t, :]
        for l, (wih, whh, b) in enumerate(layer_params):
            g = [inp @ wih[k] + h[l] @ whh[k] + b[k] for k in range(4)]
            i_g = jax.nn.sigmoid(g[0])
            f_g = jax.nn.sigmoid(g[1])
            g_g = jnp.tanh(g[2])
            o_g = jax.nn.sigmoid(g[3])
            c[l] = f_g * c[l] + i_g * g_g
            h[l] = o_g * jnp.tanh(c[l])
            inp = h[l]
    return inp @ wfc + bfc


if __name__ == "__main__":
    # Module hyperparameters (small, consistent with the forward pass).
    vocab = 50          # glove_matrix.shape[0]
    em_dim = 32
    hidden_dim = 32
    num_layers = 2
    out_dim = 8
    B, T = 2, 8

    key = jax.random.PRNGKey(0)
    ks = list(jax.random.split(key, 4 + 4 * num_layers))

    # Deterministic parameter init (synthetic; PyTorch-like 1/sqrt(H) scale).
    scale = 1.0 / jnp.sqrt(hidden_dim)
    emb_matrix = jax.random.normal(ks[0], (vocab, em_dim), jnp.float32) * 0.1

    layer_params = []
    kidx = 1
    for l in range(num_layers):
        in_l = em_dim if l == 0 else hidden_dim
        # stored as (4, in, H) / (4, H, H) / (4, 1, H): gate order i, f, g, o
        # (bias is b_ih + b_hh combined).
        wih = jax.random.uniform(ks[kidx], (4, in_l, hidden_dim),
                                 jnp.float32, -scale, scale)
        whh = jax.random.uniform(ks[kidx + 1], (4, hidden_dim, hidden_dim),
                                 jnp.float32, -scale, scale)
        b = jax.random.uniform(ks[kidx + 2], (4, 1, hidden_dim),
                               jnp.float32, -scale, scale)
        layer_params.append((wih, whh, b))
        kidx += 3

    wfc = jax.random.uniform(ks[kidx], (hidden_dim, out_dim),
                             jnp.float32, -scale, scale)
    bfc = jax.random.uniform(ks[kidx + 1], (1, out_dim),
                             jnp.float32, -scale, scale)

    tokens = jax.random.randint(ks[kidx + 2], (B, T), 0, vocab, jnp.int32)

    out = lstm_pallas(tokens, emb_matrix, layer_params, wfc, bfc)
    out = jax.block_until_ready(out)

    ref = lstm_ref(tokens, emb_matrix, layer_params, wfc, bfc)
    assert out.shape == (B, out_dim)
    assert jnp.allclose(out, ref, atol=1e-4, rtol=1e-4), (
        f"mismatch: max abs diff {jnp.max(jnp.abs(out - ref))}")

    print("KERNEL_OK")
</pallas_src>

<mosaic_0001>
module attributes {stable_mosaic.version = 11 : i64} {
  func.func @kernel(%arg0: i32, %arg1: memref<72x32xf32, #tpu.memory_space<vmem>>, %arg2: memref<32x256xf32, #tpu.memory_space<vmem>>, %arg3: memref<1x256xf32, #tpu.memory_space<vmem>>, %arg4: memref<64x256xf32, #tpu.memory_space<vmem>>, %arg5: memref<32x128xf32, #tpu.memory_space<vmem>>, %arg6: memref<1x128xf32, #tpu.memory_space<vmem>>, %arg7: memref<8x128xf32, #tpu.memory_space<vmem>>) attributes {dimension_semantics = [#tpu.dimension_semantics<arbitrary>], iteration_bounds = array<i64: 1>, scalar_prefetch = 0 : i64, scratch_operands = 0 : i64, tpu.core_type = #tpu.core_type<tc>, window_params = [{pipeline_mode = #tpu.pipeline_mode<synchronous>, transform_indices = @transform_0, window_bounds = array<i64: 72, 32>}, {pipeline_mode = #tpu.pipeline_mode<synchronous>, transform_indices = @transform_1, window_bounds = array<i64: 32, 256>}, {pipeline_mode = #tpu.pipeline_mode<synchronous>, transform_indices = @transform_2, window_bounds = array<i64: 1, 256>}, {pipeline_mode = #tpu.pipeline_mode<synchronous>, transform_indices = @transform_3, window_bounds = array<i64: 64, 256>}, {pipeline_mode = #tpu.pipeline_mode<synchronous>, transform_indices = @transform_4, window_bounds = array<i64: 32, 128>}, {pipeline_mode = #tpu.pipeline_mode<synchronous>, transform_indices = @transform_5, window_bounds = array<i64: 1, 128>}, {pipeline_mode = #tpu.pipeline_mode<synchronous>, transform_indices = @transform_6, window_bounds = array<i64: 8, 128>}]} {
    %c0 = arith.constant 0 : index
    %c0_0 = arith.constant 0 : index
    %0 = vector.load %arg1[%c0, %c0_0] : memref<72x32xf32, #tpu.memory_space<vmem>>, vector<72x32xf32>
    %c0_1 = arith.constant 0 : index
    %c0_2 = arith.constant 0 : index
    %1 = vector.load %arg2[%c0_1, %c0_2] : memref<32x256xf32, #tpu.memory_space<vmem>>, vector<32x256xf32>
    %cst = arith.constant dense<0.000000e+00> : vector<72x256xf32>
    %2 = tpu.matmul %0, %1, %cst {dimension_numbers = #tpu.dot_dimension_numbers<[1], [0], [0], [1], [0, 0, 1, 1], [], []>} : vector<72x32xf32>, vector<32x256xf32>, vector<72x256xf32> -> vector<72x256xf32>
    %c0_3 = arith.constant 0 : index
    %c0_4 = arith.constant 0 : index
    %3 = vector.load %arg3[%c0_3, %c0_4] : memref<1x256xf32, #tpu.memory_space<vmem>>, vector<1x256xf32>
    %4 = vector.broadcast %3 : vector<1x256xf32> to vector<72x256xf32>
    %5 = arith.addf %2, %4 : vector<72x256xf32>
    %c0_5 = arith.constant 0 : index
    %c0_6 = arith.constant 0 : index
    %6 = vector.load %arg4[%c0_5, %c0_6] : memref<64x256xf32, #tpu.memory_space<vmem>>, vector<64x256xf32>
    %7 = tpu.iota {dimensions = array<i32: 1>} : vector<8x256xi32>
    %c128_i32 = arith.constant 128 : i32
    %c0_i32 = arith.constant 0 : i32
    %8 = arith.cmpi eq, %c128_i32, %c0_i32 : i32
    %c1_i32 = arith.constant 1 : i32
    %9 = arith.select %8, %c1_i32, %c128_i32 : i32
    %10 = vector.broadcast %9 : i32 to vector<8x256xi32>
    %11 = arith.remsi %7, %10 : vector<8x256xi32>
    %c0_i32_7 = arith.constant 0 : i32
    %12 = vector.broadcast %c0_i32_7 : i32 to vector<8x256xi32>
    %13 = arith.cmpi ne, %11, %12 : vector<8x256xi32>
    %c0_i32_8 = arith.constant 0 : i32
    %14 = vector.broadcast %c0_i32_8 : i32 to vector<8x256xi32>
    %15 = arith.cmpi slt, %11, %14 : vector<8x256xi32>
    %c0_i32_9 = arith.constant 0 : i32
    %16 = arith.cmpi slt, %9, %c0_i32_9 : i32
    %17 = vector.broadcast %16 : i1 to vector<8x256xi1>
    %18 = vector.broadcast %17 : vector<8x256xi1> to vector<8x256xi1>
    %19 = arith.xori %15, %18 : vector<8x256xi1>
    %20 = arith.andi %19, %13 : vector<8x256xi1>
    %21 = vector.broadcast %9 : i32 to vector<8x256xi32>
    %22 = arith.addi %11, %21 : vector<8x256xi32>
    %23 = arith.select %20, %22, %11 : vector<8x256xi1>, vector<8x256xi32>
    %c64_i32 = arith.constant 64 : i32
    %24 = vector.broadcast %c64_i32 : i32 to vector<8x256xi32>
    %25 = arith.cmpi sge, %23, %24 : vector<8x256xi32>
    %c96_i32 = arith.constant 96 : i32
    %26 = vector.broadcast %c96_i32 : i32 to vector<8x256xi32>
    %27 = arith.cmpi slt, %23, %26 : vector<8x256xi32>
    %28 = arith.andi %25, %27 : vector<8x256xi1>
    %cst_10 = arith.constant 0.000000e+00 : f32
    %29 = vector.broadcast %cst_10 : f32 to vector<8x32xf32>
    %30 = tpu.concatenate %29, %29 in 1 : vector<8x32xf32>, vector<8x32xf32> -> vector<8x64xf32>
    %31 = vector.extract_strided_slice %5 {offsets = [0, 0], sizes = [8, 256], strides = [1, 1]} : vector<72x256xf32> to vector<8x256xf32>
    %cst_11 = arith.constant dense<0.000000e+00> : vector<8x256xf32>
    %32 = tpu.matmul %30, %6, %cst_11 {dimension_numbers = #tpu.dot_dimension_numbers<[1], [0], [0], [1], [0, 0, 1, 1], [], []>} : vector<8x64xf32>, vector<64x256xf32>, vector<8x256xf32> -> vector<8x256xf32>
    %33 = arith.addf %31, %32 : vector<8x256xf32>
    %34 = math.tanh %33 : vector<8x256xf32>
    %cst_12 = arith.constant 5.000000e-01 : f32
    %35 = vector.broadcast %cst_12 : f32 to vector<8x256xf32>
    %36 = arith.mulf %35, %34 : vector<8x256xf32>
    %cst_13 = arith.constant 5.000000e-01 : f32
    %37 = vector.broadcast %cst_13 : f32 to vector<8x256xf32>
    %38 = arith.addf %36, %37 : vector<8x256xf32>
    %39 = arith.select %28, %34, %38 : vector<8x256xi1>, vector<8x256xf32>
    %40 = vector.extract_strided_slice %39 {offsets = [0, 0], sizes = [8, 128], strides = [1, 1]} : vector<8x256xf32> to vector<8x128xf32>
    %41 = vector.extract_strided_slice %40 {offsets = [0, 0], sizes = [8, 32], strides = [1, 1]} : vector<8x128xf32> to vector<8x32xf32>
    %42 = vector.extract_strided_slice %40 {offsets = [0, 32], sizes = [8, 32], strides = [1, 1]} : vector<8x128xf32> to vector<8x32xf32>
    %43 = vector.extract_strided_slice %40 {offsets = [0, 64], sizes = [8, 32], strides = [1, 1]} : vector<8x128xf32> to vector<8x32xf32>
    %44 = vector.extract_strided_slice %40 {offsets = [0, 96], sizes = [8, 32], strides = [1, 1]} : vector<8x128xf32> to vector<8x32xf32>
    %45 = arith.mulf %42, %29 : vector<8x32xf32>
    %46 = arith.mulf %41, %43 : vector<8x32xf32>
    %47 = arith.addf %45, %46 : vector<8x32xf32>
    %48 = math.tanh %47 : vector<8x32xf32>
    %49 = arith.mulf %44, %48 : vector<8x32xf32>
    %50 = tpu.concatenate %49, %29 in 1 : vector<8x32xf32>, vector<8x32xf32> -> vector<8x64xf32>
    %51 = vector.extract_strided_slice %5 {offsets = [8, 0], sizes = [8, 256], strides = [1, 1]} : vector<72x256xf32> to vector<8x256xf32>
    %cst_14 = arith.constant dense<0.000000e+00> : vector<8x256xf32>
    %52 = tpu.matmul %50, %6, %cst_14 {dimension_numbers = #tpu.dot_dimension_numbers<[1], [0], [0], [1], [0, 0, 1, 1], [], []>} : vector<8x64xf32>, vector<64x256xf32>, vector<8x256xf32> -> vector<8x256xf32>
    %53 = arith.addf %51, %52 : vector<8x256xf32>
    %54 = math.tanh %53 : vector<8x256xf32>
    %cst_15 = arith.constant 5.000000e-01 : f32
    %55 = vector.broadcast %cst_15 : f32 to vector<8x256xf32>
    %56 = arith.mulf %55, %54 : vector<8x256xf32>
    %cst_16 = arith.constant 5.000000e-01 : f32
    %57 = vector.broadcast %cst_16 : f32 to vector<8x256xf32>
    %58 = arith.addf %56, %57 : vector<8x256xf32>
    %59 = arith.select %28, %54, %58 : vector<8x256xi1>, vector<8x256xf32>
    %60 = vector.extract_strided_slice %59 {offsets = [0, 0], sizes = [8, 128], strides = [1, 1]} : vector<8x256xf32> to vector<8x128xf32>
    %61 = vector.extract_strided_slice %60 {offsets = [0, 0], sizes = [8, 32], strides = [1, 1]} : vector<8x128xf32> to vector<8x32xf32>
    %62 = vector.extract_strided_slice %60 {offsets = [0, 32], sizes = [8, 32], strides = [1, 1]} : vector<8x128xf32> to vector<8x32xf32>
    %63 = vector.extract_strided_slice %60 {offsets = [0, 64], sizes = [8, 32], strides = [1, 1]} : vector<8x128xf32> to vector<8x32xf32>
    %64 = vector.extract_strided_slice %60 {offsets = [0, 96], sizes = [8, 32], strides = [1, 1]} : vector<8x128xf32> to vector<8x32xf32>
    %65 = arith.mulf %62, %47 : vector<8x32xf32>
    %66 = arith.mulf %61, %63 : vector<8x32xf32>
    %67 = arith.addf %65, %66 : vector<8x32xf32>
    %68 = math.tanh %67 : vector<8x32xf32>
    %69 = arith.mulf %64, %68 : vector<8x32xf32>
    %70 = vector.extract_strided_slice %59 {offsets = [0, 128], sizes = [8, 128], strides = [1, 1]} : vector<8x256xf32> to vector<8x128xf32>
    %71 = vector.extract_strided_slice %70 {offsets = [0, 0], sizes = [8, 32], strides = [1, 1]} : vector<8x128xf32> to vector<8x32xf32>
    %72 = vector.extract_strided_slice %70 {offsets = [0, 32], sizes = [8, 32], strides = [1, 1]} : vector<8x128xf32> to vector<8x32xf32>
    %73 = vector.extract_strided_slice %70 {offsets = [0, 64], sizes = [8, 32], strides = [1, 1]} : vector<8x128xf32> to vector<8x32xf32>
    %74 = vector.extract_strided_slice %70 {offsets = [0, 96], sizes = [8, 32], strides = [1, 1]} : vector<8x128xf32> to vector<8x32xf32>
    %75 = arith.mulf %72, %29 : vector<8x32xf32>
    %76 = arith.mulf %71, %73 : vector<8x32xf32>
    %77 = arith.addf %75, %76 : vector<8x32xf32>
    %78 = math.tanh %77 : vector<8x32xf32>
    %79 = arith.mulf %74, %78 : vector<8x32xf32>
    %80 = tpu.concatenate %69, %79 in 1 : vector<8x32xf32>, vector<8x32xf32> -> vector<8x64xf32>
    %81 = vector.extract_strided_slice %5 {offsets = [16, 0], sizes = [8, 256], strides = [1, 1]} : vector<72x256xf32> to vector<8x256xf32>
    %cst_17 = arith.constant dense<0.000000e+00> : vector<8x256xf32>
    %82 = tpu.matmul %80, %6, %cst_17 {dimension_numbers = #tpu.dot_dimension_numbers<[1], [0], [0], [1], [0, 0, 1, 1], [], []>} : vector<8x64xf32>, vector<64x256xf32>, vector<8x256xf32> -> vector<8x256xf32>
    %83 = arith.addf %81, %82 : vector<8x256xf32>
    %84 = math.tanh %83 : vector<8x256xf32>
    %cst_18 = arith.constant 5.000000e-01 : f32
    %85 = vector.broadcast %cst_18 : f32 to vector<8x256xf32>
    %86 = arith.mulf %85, %84 : vector<8x256xf32>
    %cst_19 = arith.constant 5.000000e-01 : f32
    %87 = vector.broadcast %cst_19 : f32 to vector<8x256xf32>
    %88 = arith.addf %86, %87 : vector<8x256xf32>
    %89 = arith.select %28, %84, %88 : vector<8x256xi1>, vector<8x256xf32>
    %90 = vector.extract_strided_slice %89 {offsets = [0, 0], sizes = [8, 128], strides = [1, 1]} : vector<8x256xf32> to vector<8x128xf32>
    %91 = vector.extract_strided_slice %90 {offsets = [0, 0], sizes = [8, 32], strides = [1, 1]} : vector<8x128xf32> to vector<8x32xf32>
    %92 = vector.extract_strided_slice %90 {offsets = [0, 32], sizes = [8, 32], strides = [1, 1]} : vector<8x128xf32> to vector<8x32xf32>
    %93 = vector.extract_strided_slice %90 {offsets = [0, 64], sizes = [8, 32], strides = [1, 1]} : vector<8x128xf32> to vector<8x32xf32>
    %94 = vector.extract_strided_slice %90 {offsets = [0, 96], sizes = [8, 32], strides = [1, 1]} : vector<8x128xf32> to vector<8x32xf32>
    %95 = arith.mulf %92, %67 : vector<8x32xf32>
    %96 = arith.mulf %91, %93 : vector<8x32xf32>
    %97 = arith.addf %95, %96 : vector<8x32xf32>
    %98 = math.tanh %97 : vector<8x32xf32>
    %99 = arith.mulf %94, %98 : vector<8x32xf32>
    %100 = vector.extract_strided_slice %89 {offsets = [0, 128], sizes = [8, 128], strides = [1, 1]} : vector<8x256xf32> to vector<8x128xf32>
    %101 = vector.extract_strided_slice %100 {offsets = [0, 0], sizes = [8, 32], strides = [1, 1]} : vector<8x128xf32> to vector<8x32xf32>
    %102 = vector.extract_strided_slice %100 {offsets = [0, 32], sizes = [8, 32], strides = [1, 1]} : vector<8x128xf32> to vector<8x32xf32>
    %103 = vector.extract_strided_slice %100 {offsets = [0, 64], sizes = [8, 32], strides = [1, 1]} : vector<8x128xf32> to vector<8x32xf32>
    %104 = vector.extract_strided_slice %100 {offsets = [0, 96], sizes = [8, 32], strides = [1, 1]} : vector<8x128xf32> to vector<8x32xf32>
    %105 = arith.mulf %102, %77 : vector<8x32xf32>
    %106 = arith.mulf %101, %103 : vector<8x32xf32>
    %107 = arith.addf %105, %106 : vector<8x32xf32>
    %108 = math.tanh %107 : vector<8x32xf32>
    %109 = arith.mulf %104, %108 : vector<8x32xf32>
    %110 = tpu.concatenate %99, %109 in 1 : vector<8x32xf32>, vector<8x32xf32> -> vector<8x64xf32>
    %111 = vector.extract_strided_slice %5 {offsets = [24, 0], sizes = [8, 256], strides = [1, 1]} : vector<72x256xf32> to vector<8x256xf32>
    %cst_20 = arith.constant dense<0.000000e+00> : vector<8x256xf32>
    %112 = tpu.matmul %110, %6, %cst_20 {dimension_numbers = #tpu.dot_dimension_numbers<[1], [0], [0], [1], [0, 0, 1, 1], [], []>} : vector<8x64xf32>, vector<64x256xf32>, vector<8x256xf32> -> vector<8x256xf32>
    %113 = arith.addf %111, %112 : vector<8x256xf32>
    %114 = math.tanh %113 : vector<8x256xf32>
    %cst_21 = arith.constant 5.000000e-01 : f32
    %115 = vector.broadcast %cst_21 : f32 to vector<8x256xf32>
    %116 = arith.mulf %115, %114 : vector<8x256xf32>
    %cst_22 = arith.constant 5.000000e-01 : f32
    %117 = vector.broadcast %cst_22 : f32 to vector<8x256xf32>
    %118 = arith.addf %116, %117 : vector<8x256xf32>
    %119 = arith.select %28, %114, %118 : vector<8x256xi1>, vector<8x256xf32>
    %120 = vector.extract_strided_slice %119 {offsets = [0, 0], sizes = [8, 128], strides = [1, 1]} : vector<8x256xf32> to vector<8x128xf32>
    %121 = vector.extract_strided_slice %120 {offsets = [0, 0], sizes = [8, 32], strides = [1, 1]} : vector<8x128xf32> to vector<8x32xf32>
    %122 = vector.extract_strided_slice %120 {offsets = [0, 32], sizes = [8, 32], strides = [1, 1]} : vector<8x128xf32> to vector<8x32xf32>
    %123 = vector.extract_strided_slice %120 {offsets = [0, 64], sizes = [8, 32], strides = [1, 1]} : vector<8x128xf32> to vector<8x32xf32>
    %124 = vector.extract_strided_slice %120 {offsets = [0, 96], sizes = [8, 32], strides = [1, 1]} : vector<8x128xf32> to vector<8x32xf32>
    %125 = arith.mulf %122, %97 : vector<8x32xf32>
    %126 = arith.mulf %121, %123 : vector<8x32xf32>
    %127 = arith.addf %125, %126 : vector<8x32xf32>
    %128 = math.tanh %127 : vector<8x32xf32>
    %129 = arith.mulf %124, %128 : vector<8x32xf32>
    %130 = vector.extract_strided_slice %119 {offsets = [0, 128], sizes = [8, 128], strides = [1, 1]} : vector<8x256xf32> to vector<8x128xf32>
    %131 = vector.extract_strided_slice %130 {offsets = [0, 0], sizes = [8, 32], strides = [1, 1]} : vector<8x128xf32> to vector<8x32xf32>
    %132 = vector.extract_strided_slice %130 {offsets = [0, 32], sizes = [8, 32], strides = [1, 1]} : vector<8x128xf32> to vector<8x32xf32>
    %133 = vector.extract_strided_slice %130 {offsets = [0, 64], sizes = [8, 32], strides = [1, 1]} : vector<8x128xf32> to vector<8x32xf32>
    %134 = vector.extract_strided_slice %130 {offsets = [0, 96], sizes = [8, 32], strides = [1, 1]} : vector<8x128xf32> to vector<8x32xf32>
    %135 = arith.mulf %132, %107 : vector<8x32xf32>
    %136 = arith.mulf %131, %133 : vector<8x32xf32>
    %137 = arith.addf %135, %136 : vector<8x32xf32>
    %138 = math.tanh %137 : vector<8x32xf32>
    %139 = arith.mulf %134, %138 : vector<8x32xf32>
    %140 = tpu.concatenate %129, %139 in 1 : vector<8x32xf32>, vector<8x32xf32> -> vector<8x64xf32>
    %141 = vector.extract_strided_slice %5 {offsets = [32, 0], sizes = [8, 256], strides = [1, 1]} : vector<72x256xf32> to vector<8x256xf32>
    %cst_23 = arith.constant dense<0.000000e+00> : vector<8x256xf32>
    %142 = tpu.matmul %140, %6, %cst_23 {dimension_numbers = #tpu.dot_dimension_numbers<[1], [0], [0], [1], [0, 0, 1, 1], [], []>} : vector<8x64xf32>, vector<64x256xf32>, vector<8x256xf32> -> vector<8x256xf32>
    %143 = arith.addf %141, %142 : vector<8x256xf32>
    %144 = math.tanh %143 : vector<8x256xf32>
    %cst_24 = arith.constant 5.000000e-01 : f32
    %145 = vector.broadcast %cst_24 : f32 to vector<8x256xf32>
    %146 = arith.mulf %145, %144 : vector<8x256xf32>
    %cst_25 = arith.constant 5.000000e-01 : f32
    %147 = vector.broadcast %cst_25 : f32 to vector<8x256xf32>
    %148 = arith.addf %146, %147 : vector<8x256xf32>
    %149 = arith.select %28, %144, %148 : vector<8x256xi1>, vector<8x256xf32>
    %150 = vector.extract_strided_slice %149 {offsets = [0, 0], sizes = [8, 128], strides = [1, 1]} : vector<8x256xf32> to vector<8x128xf32>
    %151 = vector.extract_strided_slice %150 {offsets = [0, 0], sizes = [8, 32], strides = [1, 1]} : vector<8x128xf32> to vector<8x32xf32>
    %152 = vector.extract_strided_slice %150 {offsets = [0, 32], sizes = [8, 32], strides = [1, 1]} : vector<8x128xf32> to vector<8x32xf32>
    %153 = vector.extract_strided_slice %150 {offsets = [0, 64], sizes = [8, 32], strides = [1, 1]} : vector<8x128xf32> to vector<8x32xf32>
    %154 = vector.extract_strided_slice %150 {offsets = [0, 96], sizes = [8, 32], strides = [1, 1]} : vector<8x128xf32> to vector<8x32xf32>
    %155 = arith.mulf %152, %127 : vector<8x32xf32>
    %156 = arith.mulf %151, %153 : vector<8x32xf32>
    %157 = arith.addf %155, %156 : vector<8x32xf32>
    %158 = math.tanh %157 : vector<8x32xf32>
    %159 = arith.mulf %154, %158 : vector<8x32xf32>
    %160 = vector.extract_strided_slice %149 {offsets = [0, 128], sizes = [8, 128], strides = [1, 1]} : vector<8x256xf32> to vector<8x128xf32>
    %161 = vector.extract_strided_slice %160 {offsets = [0, 0], sizes = [8, 32], strides = [1, 1]} : vector<8x128xf32> to vector<8x32xf32>
    %162 = vector.extract_strided_slice %160 {offsets = [0, 32], sizes = [8, 32], strides = [1, 1]} : vector<8x128xf32> to vector<8x32xf32>
    %163 = vector.extract_strided_slice %160 {offsets = [0, 64], sizes = [8, 32], strides = [1, 1]} : vector<8x128xf32> to vector<8x32xf32>
    %164 = vector.extract_strided_slice %160 {offsets = [0, 96], sizes = [8, 32], strides = [1, 1]} : vector<8x128xf32> to vector<8x32xf32>
    %165 = arith.mulf %162, %137 : vector<8x32xf32>
    %166 = arith.mulf %161, %163 : vector<8x32xf32>
    %167 = arith.addf %165, %166 : vector<8x32xf32>
    %168 = math.tanh %167 : vector<8x32xf32>
    %169 = arith.mulf %164, %168 : vector<8x32xf32>
    %170 = tpu.concatenate %159, %169 in 1 : vector<8x32xf32>, vector<8x32xf32> -> vector<8x64xf32>
    %171 = vector.extract_strided_slice %5 {offsets = [40, 0], sizes = [8, 256], strides = [1, 1]} : vector<72x256xf32> to vector<8x256xf32>
    %cst_26 = arith.constant dense<0.000000e+00> : vector<8x256xf32>
    %172 = tpu.matmul %170, %6, %cst_26 {dimension_numbers = #tpu.dot_dimension_numbers<[1], [0], [0], [1], [0, 0, 1, 1], [], []>} : vector<8x64xf32>, vector<64x256xf32>, vector<8x256xf32> -> vector<8x256xf32>
    %173 = arith.addf %171, %172 : vector<8x256xf32>
    %174 = math.tanh %173 : vector<8x256xf32>
    %cst_27 = arith.constant 5.000000e-01 : f32
    %175 = vector.broadcast %cst_27 : f32 to vector<8x256xf32>
    %176 = arith.mulf %175, %174 : vector<8x256xf32>
    %cst_28 = arith.constant 5.000000e-01 : f32
    %177 = vector.broadcast %cst_28 : f32 to vector<8x256xf32>
    %178 = arith.addf %176, %177 : vector<8x256xf32>
    %179 = arith.select %28, %174, %178 : vector<8x256xi1>, vector<8x256xf32>
    %180 = vector.extract_strided_slice %179 {offsets = [0, 0], sizes = [8, 128], strides = [1, 1]} : vector<8x256xf32> to vector<8x128xf32>
    %181 = vector.extract_strided_slice %180 {offsets = [0, 0], sizes = [8, 32], strides = [1, 1]} : vector<8x128xf32> to vector<8x32xf32>
    %182 = vector.extract_strided_slice %180 {offsets = [0, 32], sizes = [8, 32], strides = [1, 1]} : vector<8x128xf32> to vector<8x32xf32>
    %183 = vector.extract_strided_slice %180 {offsets = [0, 64], sizes = [8, 32], strides = [1, 1]} : vector<8x128xf32> to vector<8x32xf32>
    %184 = vector.extract_strided_slice %180 {offsets = [0, 96], sizes = [8, 32], strides = [1, 1]} : vector<8x128xf32> to vector<8x32xf32>
    %185 = arith.mulf %182, %157 : vector<8x32xf32>
    %186 = arith.mulf %181, %183 : vector<8x32xf32>
    %187 = arith.addf %185, %186 : vector<8x32xf32>
    %188 = math.tanh %187 : vector<8x32xf32>
    %189 = arith.mulf %184, %188 : vector<8x32xf32>
    %190 = vector.extract_strided_slice %179 {offsets = [0, 128], sizes = [8, 128], strides = [1, 1]} : vector<8x256xf32> to vector<8x128xf32>
    %191 = vector.extract_strided_slice %190 {offsets = [0, 0], sizes = [8, 32], strides = [1, 1]} : vector<8x128xf32> to vector<8x32xf32>
    %192 = vector.extract_strided_slice %190 {offsets = [0, 32], sizes = [8, 32], strides = [1, 1]} : vector<8x128xf32> to vector<8x32xf32>
    %193 = vector.extract_strided_slice %190 {offsets = [0, 64], sizes = [8, 32], strides = [1, 1]} : vector<8x128xf32> to vector<8x32xf32>
    %194 = vector.extract_strided_slice %190 {offsets = [0, 96], sizes = [8, 32], strides = [1, 1]} : vector<8x128xf32> to vector<8x32xf32>
    %195 = arith.mulf %192, %167 : vector<8x32xf32>
    %196 = arith.mulf %191, %193 : vector<8x32xf32>
    %197 = arith.addf %195, %196 : vector<8x32xf32>
    %198 = math.tanh %197 : vector<8x32xf32>
    %199 = arith.mulf %194, %198 : vector<8x32xf32>
    %200 = tpu.concatenate %189, %199 in 1 : vector<8x32xf32>, vector<8x32xf32> -> vector<8x64xf32>
    %201 = vector.extract_strided_slice %5 {offsets = [48, 0], sizes = [8, 256], strides = [1, 1]} : vector<72x256xf32> to vector<8x256xf32>
    %cst_29 = arith.constant dense<0.000000e+00> : vector<8x256xf32>
    %202 = tpu.matmul %200, %6, %cst_29 {dimension_numbers = #tpu.dot_dimension_numbers<[1], [0], [0], [1], [0, 0, 1, 1], [], []>} : vector<8x64xf32>, vector<64x256xf32>, vector<8x256xf32> -> vector<8x256xf32>
    %203 = arith.addf %201, %202 : vector<8x256xf32>
    %204 = math.tanh %203 : vector<8x256xf32>
    %cst_30 = arith.constant 5.000000e-01 : f32
    %205 = vector.broadcast %cst_30 : f32 to vector<8x256xf32>
    %206 = arith.mulf %205, %204 : vector<8x256xf32>
    %cst_31 = arith.constant 5.000000e-01 : f32
    %207 = vector.broadcast %cst_31 : f32 to vector<8x256xf32>
    %208 = arith.addf %206, %207 : vector<8x256xf32>
    %209 = arith.select %28, %204, %208 : vector<8x256xi1>, vector<8x256xf32>
    %210 = vector.extract_strided_slice %209 {offsets = [0, 0], sizes = [8, 128], strides = [1, 1]} : vector<8x256xf32> to vector<8x128xf32>
    %211 = vector.extract_strided_slice %210 {offsets = [0, 0], sizes = [8, 32], strides = [1, 1]} : vector<8x128xf32> to vector<8x32xf32>
    %212 = vector.extract_strided_slice %210 {offsets = [0, 32], sizes = [8, 32], strides = [1, 1]} : vector<8x128xf32> to vector<8x32xf32>
    %213 = vector.extract_strided_slice %210 {offsets = [0, 64], sizes = [8, 32], strides = [1, 1]} : vector<8x128xf32> to vector<8x32xf32>
    %214 = vector.extract_strided_slice %210 {offsets = [0, 96], sizes = [8, 32], strides = [1, 1]} : vector<8x128xf32> to vector<8x32xf32>
    %215 = arith.mulf %212, %187 : vector<8x32xf32>
    %216 = arith.mulf %211, %213 : vector<8x32xf32>
    %217 = arith.addf %215, %216 : vector<8x32xf32>
    %218 = math.tanh %217 : vector<8x32xf32>
    %219 = arith.mulf %214, %218 : vector<8x32xf32>
    %220 = vector.extract_strided_slice %209 {offsets = [0, 128], sizes = [8, 128], strides = [1, 1]} : vector<8x256xf32> to vector<8x128xf32>
    %221 = vector.extract_strided_slice %220 {offsets = [0, 0], sizes = [8, 32], strides = [1, 1]} : vector<8x128xf32> to vector<8x32xf32>
    %222 = vector.extract_strided_slice %220 {offsets = [0, 32], sizes = [8, 32], strides = [1, 1]} : vector<8x128xf32> to vector<8x32xf32>
    %223 = vector.extract_strided_slice %220 {offsets = [0, 64], sizes = [8, 32], strides = [1, 1]} : vector<8x128xf32> to vector<8x32xf32>
    %224 = vector.extract_strided_slice %220 {offsets = [0, 96], sizes = [8, 32], strides = [1, 1]} : vector<8x128xf32> to vector<8x32xf32>
    %225 = arith.mulf %222, %197 : vector<8x32xf32>
    %226 = arith.mulf %221, %223 : vector<8x32xf32>
    %227 = arith.addf %225, %226 : vector<8x32xf32>
    %228 = math.tanh %227 : vector<8x32xf32>
    %229 = arith.mulf %224, %228 : vector<8x32xf32>
    %230 = tpu.concatenate %219, %229 in 1 : vector<8x32xf32>, vector<8x32xf32> -> vector<8x64xf32>
    %231 = vector.extract_strided_slice %5 {offsets = [56, 0], sizes = [8, 256], strides = [1, 1]} : vector<72x256xf32> to vector<8x256xf32>
    %cst_32 = arith.constant dense<0.000000e+00> : vector<8x256xf32>
    %232 = tpu.matmul %230, %6, %cst_32 {dimension_numbers = #tpu.dot_dimension_numbers<[1], [0], [0], [1], [0, 0, 1, 1], [], []>} : vector<8x64xf32>, vector<64x256xf32>, vector<8x256xf32> -> vector<8x256xf32>
    %233 = arith.addf %231, %232 : vector<8x256xf32>
    %234 = math.tanh %233 : vector<8x256xf32>
    %cst_33 = arith.constant 5.000000e-01 : f32
    %235 = vector.broadcast %cst_33 : f32 to vector<8x256xf32>
    %236 = arith.mulf %235, %234 : vector<8x256xf32>
    %cst_34 = arith.constant 5.000000e-01 : f32
    %237 = vector.broadcast %cst_34 : f32 to vector<8x256xf32>
    %238 = arith.addf %236, %237 : vector<8x256xf32>
    %239 = arith.select %28, %234, %238 : vector<8x256xi1>, vector<8x256xf32>
    %240 = vector.extract_strided_slice %239 {offsets = [0, 0], sizes = [8, 128], strides = [1, 1]} : vector<8x256xf32> to vector<8x128xf32>
    %241 = vector.extract_strided_slice %240 {offsets = [0, 0], sizes = [8, 32], strides = [1, 1]} : vector<8x128xf32> to vector<8x32xf32>
    %242 = vector.extract_strided_slice %240 {offsets = [0, 32], sizes = [8, 32], strides = [1, 1]} : vector<8x128xf32> to vector<8x32xf32>
    %243 = vector.extract_strided_slice %240 {offsets = [0, 64], sizes = [8, 32], strides = [1, 1]} : vector<8x128xf32> to vector<8x32xf32>
    %244 = vector.extract_strided_slice %240 {offsets = [0, 96], sizes = [8, 32], strides = [1, 1]} : vector<8x128xf32> to vector<8x32xf32>
    %245 = arith.mulf %242, %217 : vector<8x32xf32>
    %246 = arith.mulf %241, %243 : vector<8x32xf32>
    %247 = arith.addf %245, %246 : vector<8x32xf32>
    %248 = math.tanh %247 : vector<8x32xf32>
    %249 = arith.mulf %244, %248 : vector<8x32xf32>
    %250 = vector.extract_strided_slice %239 {offsets = [0, 128], sizes = [8, 128], strides = [1, 1]} : vector<8x256xf32> to vector<8x128xf32>
    %251 = vector.extract_strided_slice %250 {offsets = [0, 0], sizes = [8, 32], strides = [1, 1]} : vector<8x128xf32> to vector<8x32xf32>
    %252 = vector.extract_strided_slice %250 {offsets = [0, 32], sizes = [8, 32], strides = [1, 1]} : vector<8x128xf32> to vector<8x32xf32>
    %253 = vector.extract_strided_slice %250 {offsets = [0, 64], sizes = [8, 32], strides = [1, 1]} : vector<8x128xf32> to vector<8x32xf32>
    %254 = vector.extract_strided_slice %250 {offsets = [0, 96], sizes = [8, 32], strides = [1, 1]} : vector<8x128xf32> to vector<8x32xf32>
    %255 = arith.mulf %252, %227 : vector<8x32xf32>
    %256 = arith.mulf %251, %253 : vector<8x32xf32>
    %257 = arith.addf %255, %256 : vector<8x32xf32>
    %258 = math.tanh %257 : vector<8x32xf32>
    %259 = arith.mulf %254, %258 : vector<8x32xf32>
    %260 = tpu.concatenate %249, %259 in 1 : vector<8x32xf32>, vector<8x32xf32> -> vector<8x64xf32>
    %261 = vector.extract_strided_slice %5 {offsets = [64, 0], sizes = [8, 256], strides = [1, 1]} : vector<72x256xf32> to vector<8x256xf32>
    %cst_35 = arith.constant dense<0.000000e+00> : vector<8x256xf32>
    %262 = tpu.matmul %260, %6, %cst_35 {dimension_numbers = #tpu.dot_dimension_numbers<[1], [0], [0], [1], [0, 0, 1, 1], [], []>} : vector<8x64xf32>, vector<64x256xf32>, vector<8x256xf32> -> vector<8x256xf32>
    %263 = arith.addf %261, %262 : vector<8x256xf32>
    %264 = math.tanh %263 : vector<8x256xf32>
    %cst_36 = arith.constant 5.000000e-01 : f32
    %265 = vector.broadcast %cst_36 : f32 to vector<8x256xf32>
    %266 = arith.mulf %265, %264 : vector<8x256xf32>
    %cst_37 = arith.constant 5.000000e-01 : f32
    %267 = vector.broadcast %cst_37 : f32 to vector<8x256xf32>
    %268 = arith.addf %266, %267 : vector<8x256xf32>
    %269 = arith.select %28, %264, %268 : vector<8x256xi1>, vector<8x256xf32>
    %270 = vector.extract_strided_slice %269 {offsets = [0, 128], sizes = [8, 128], strides = [1, 1]} : vector<8x256xf32> to vector<8x128xf32>
    %271 = vector.extract_strided_slice %270 {offsets = [0, 0], sizes = [8, 32], strides = [1, 1]} : vector<8x128xf32> to vector<8x32xf32>
    %272 = vector.extract_strided_slice %270 {offsets = [0, 32], sizes = [8, 32], strides = [1, 1]} : vector<8x128xf32> to vector<8x32xf32>
    %273 = vector.extract_strided_slice %270 {offsets = [0, 64], sizes = [8, 32], strides = [1, 1]} : vector<8x128xf32> to vector<8x32xf32>
    %274 = vector.extract_strided_slice %270 {offsets = [0, 96], sizes = [8, 32], strides = [1, 1]} : vector<8x128xf32> to vector<8x32xf32>
    %275 = arith.mulf %272, %257 : vector<8x32xf32>
    %276 = arith.mulf %271, %273 : vector<8x32xf32>
    %277 = arith.addf %275, %276 : vector<8x32xf32>
    %278 = math.tanh %277 : vector<8x32xf32>
    %279 = arith.mulf %274, %278 : vector<8x32xf32>
    %c0_38 = arith.constant 0 : index
    %c0_39 = arith.constant 0 : index
    %280 = vector.load %arg5[%c0_38, %c0_39] : memref<32x128xf32, #tpu.memory_space<vmem>>, vector<32x128xf32>
    %cst_40 = arith.constant dense<0.000000e+00> : vector<8x128xf32>
    %281 = tpu.matmul %279, %280, %cst_40 {dimension_numbers = #tpu.dot_dimension_numbers<[1], [0], [0], [1], [0, 0, 1, 1], [], []>} : vector<8x32xf32>, vector<32x128xf32>, vector<8x128xf32> -> vector<8x128xf32>
    %c0_41 = arith.constant 0 : index
    %c0_42 = arith.constant 0 : index
    %282 = vector.load %arg6[%c0_41, %c0_42] : memref<1x128xf32, #tpu.memory_space<vmem>>, vector<1x128xf32>
    %283 = vector.broadcast %282 : vector<1x128xf32> to vector<8x128xf32>
    %284 = arith.addf %281, %283 : vector<8x128xf32>
    %c0_43 = arith.constant 0 : index
    %c0_44 = arith.constant 0 : index
    %285 = vector.load %arg7[%c0_43, %c0_44] : memref<8x128xf32, #tpu.memory_space<vmem>>, vector<8x128xf32>
    tpu.vector_store %arg7[%c0_43, %c0_44], %284 {strides = array<i32>} : memref<8x128xf32, #tpu.memory_space<vmem>>, vector<8x128xf32>,
    return
  }
  func.func @transform_0(%arg0: i32) -> (i32, i32) {
    %c0_i32 = arith.constant 0 : i32
    %c0_i32_0 = arith.constant 0 : i32
    %c0_i32_1 = arith.constant 0 : i32
    return %c0_i32, %c0_i32_0 : i32, i32
  }
  func.func @transform_1(%arg0: i32) -> (i32, i32) {
    %c0_i32 = arith.constant 0 : i32
    %c0_i32_0 = arith.constant 0 : i32
    %c0_i32_1 = arith.constant 0 : i32
    return %c0_i32, %c0_i32_0 : i32, i32
  }
  func.func @transform_2(%arg0: i32) -> (i32, i32) {
    %c0_i32 = arith.constant 0 : i32
    %c0_i32_0 = arith.constant 0 : i32
    %c0_i32_1 = arith.constant 0 : i32
    return %c0_i32, %c0_i32_0 : i32, i32
  }
  func.func @transform_3(%arg0: i32) -> (i32, i32) {
    %c0_i32 = arith.constant 0 : i32
    %c0_i32_0 = arith.constant 0 : i32
    %c0_i32_1 = arith.constant 0 : i32
    return %c0_i32, %c0_i32_0 : i32, i32
  }
  func.func @transform_4(%arg0: i32) -> (i32, i32) {
    %c0_i32 = arith.constant 0 : i32
    %c0_i32_0 = arith.constant 0 : i32
    %c0_i32_1 = arith.constant 0 : i32
    return %c0_i32, %c0_i32_0 : i32, i32
  }
  func.func @transform_5(%arg0: i32) -> (i32, i32) {
    %c0_i32 = arith.constant 0 : i32
    %c0_i32_0 = arith.constant 0 : i32
    %c0_i32_1 = arith.constant 0 : i32
    return %c0_i32, %c0_i32_0 : i32, i32
  }
  func.func @transform_6(%arg0: i32) -> (i32, i32) {
    %c0_i32 = arith.constant 0 : i32
    %c0_i32_0 = arith.constant 0 : i32
    %c0_i32_1 = arith.constant 0 : i32
    return %c0_i32, %c0_i32_0 : i32, i32
  }
}

</mosaic_0001>

<bundles_post_ra>
// kernel: tpu_custom_call.1
= control target key start
LH: loop header
LB: loop body
LE: loop exit
PB: predicated region body
PF: predicated region fallthrough
CT: control target
= control target key end

     0   :  { %11 = vsyncpa [#allocation3], 0  ;;  %s2112_s0 = inlined_call_operand.vmem [shape: f32[72,32], index: 0, kind: input, shape index: {}]   ;;  %s2113_s1 = inlined_call_operand.vmem [shape: f32[32,256], index: 1, kind: input, shape index: {}]   ;;  %s2114_s2 = inlined_call_operand.vmem [shape: f32[1,256], index: 2, kind: input, shape index: {}]   ;;  %s2115_s3 = inlined_call_operand.hbm [shape: f32[64,256], index: 3, kind: input, shape index: {}]   ;;  %s2116_s4 = inlined_call_operand.vmem [shape: f32[32,128], index: 4, kind: input, shape index: {}]   ;;  %s2117_s5 = inlined_call_operand.vmem [shape: f32[1,128], index: 5, kind: input, shape index: {}]   ;;  %s2118_s6 = inlined_call_operand.hbm [shape: f32[8,128], index: 6, kind: output, shape index: {}]  }
   0x1   :  { %12 = vsyncpa [#allocation4], 0  ;;  %s1599_s21 = smov [#allocation2]  }
   0x2   :  { %s24_s22 = sshll.u32 %s1599_s21, 4  ;;  %s25_s22 = int_to_ptr.vmem [resolvable:$true] %s24_s22 }
   0x3   :  { %s1563_s23 = scalar_lea.vmem %s25_s22, 2048  ;;  %p1568_p1 = scmp.lt.s32.totalorder %s25_s22, %s25_s22 }
   0x4   :  { %p1564_p0 = scmp.ne.s32.totalorder %s25_s22, %s1563_s23  ;;  %p1569_p2 = scmp.lt.s32.totalorder %s1563_s23, %s1563_s23 }
   0x6   :  { %p1570_p3 = por %p1569_p2, %p1568_p1 }
   0x8   :  { %p1571_p4 = pnand %p1570_p3, %p1564_p0 }
   0xa   :  { %1574 = shalt.err (!%p1571_p4)
}
   0xb   :  { %s1600_s24 = smov 256   ;;  %s1601_s25 = smov 16  }
   0xc   :  { %30 = dma.hbm_to_vmem [thread:$0]  %s2115_s3, 2048, %s25_s22, [#allocation3], %s1600_s24, %s1600_s24, %s1601_s25  }
   0xd   :  { %1595 = dma.done.wait [#allocation3], 2048  }
   0xe   :  { %1596 = vsyncadd [#allocation3], 4294965248  ;;  %v1602_v0 = vmov 0.0   ;;  %v1647_v1 = vld [vmem:[#allocation2 + $0x78] sm:$0xff]  ;;  %v1649_v2 = vld [vmem:[#allocation2 + $0x70] sm:$0xff]  ;;  %vm67_vm0 = vcmask 261120   ;;  %v57_v26 = vlaneseq }
   0xf   :  { %159 = vmatprep.mubr.f32.mxu0 %v1602_v0  ;;  %329 = vmatprep.mubr.f32.mxu1 %v1602_v0  ;;  %v1651_v3 = vld [vmem:[#allocation2 + $0x68] sm:$0xff]  ;;  %v1654_v4 = vld [vmem:[#allocation2 + $0x60] sm:$0xff]  ;;  %v54_v5 = vld [vmem:[%s2113_s1 + $0x38] sm:$0xff]  ;;  %s1604_s22 = smov 32   ;;  %vm261_vm4 = vcmask 523264   ;;  %vm1605_vm8 = vmmov 0  }
  0x10   :  { %281 = vmatprep.subr.mxu1 %v1647_v1  ;;  %119 = vmatprep.subr.mxu0 %v54_v5  ;;  %v1660_v6 = vld [vmem:[#allocation2 + $0x58] sm:$0xff]  ;;  %v53_v7 = vld [vmem:[%s2113_s1 + $0x30] sm:$0xff]  ;;  %v52_v8 = vld [vmem:[%s2113_s1 + $0x28] sm:$0xff]  ;;  %v58_v27 = vshrl.u32 %v57_v26, 7  ;;  %v229_v37 = vand.u32 127, %v57_v26  ;;  %s1606_s23 = smov [#allocation5]  }
  0x11   :  { %282 = vmatpush1.msra.mxu1 %v1649_v2  ;;  %120 = vmatpush1.msra.mxu0 %v53_v7  ;;  %v1669_v9 = vld [vmem:[#allocation2 + $0x50] sm:$0xff]  ;;  %v51_v10 = vld [vmem:[%s2113_s1 + $0x20] sm:$0xff]  ;;  %v1675_v11 = vld [vmem:[#allocation2 + $0x48] sm:$0xff] }
  0x12   :  { %283 = vmatprep.subr.mxu1 %v1651_v3  ;;  %121 = vmatprep.subr.mxu0 %v52_v8  ;;  %v50_v12 = vld [vmem:[%s2113_s1 + $0x18] sm:$0xff]  ;;  %v49_v13 = vld [vmem:[%s2113_s1 + $0x10] sm:$0xff]  ;;  %v1684_v14 = vld [vmem:[#allocation2 + $0x40] sm:$0xff]  ;;  %v59_v28 = vsub.s32 0, %v58_v27  ;;  %vm255_vm1 = vcmp.ge.s32.totalorder %v229_v37, 64  ;;  %vm257_vm2 = vcmp.lt.s32.totalorder %v229_v37, 96 }
  0x13   :  { %284 = vmatpush1.msra.mxu1 %v1654_v4  ;;  %122 = vmatpush1.msra.mxu0 %v51_v10  ;;  %v48_v15 = vld [vmem:[%s2113_s1 + $0x8] sm:$0xff]  ;;  %v1690_v16 = vld [vmem:[#allocation2 + $0x38] sm:$0xff]  ;;  %v47_v17 = vld [vmem:[%s2113_s1] sm:$0xff]  ;;  %v63_v54 = vsub.s32 1, %v58_v27  ;;  %v230_v5 = vadd.s32 128, %v229_v37 }
  0x14   :  { %285 = vmatprep.subr.mxu1 %v1660_v6  ;;  %123 = vmatprep.subr.mxu0 %v50_v12  ;;  %v1696_v18 = vld [vmem:[#allocation2 + $0x30] sm:$0xff]  ;;  %v38_v19 = vld [vmem:[%s2112_s0] sm:$0xff]  ;;  %v1702_v20 = vld [vmem:[#allocation2 + $0x28] sm:$0xff] }
  0x15   :  { %286 = vmatpush1.msra.mxu1 %v1669_v9  ;;  %124 = vmatpush1.msra.mxu0 %v49_v13  ;;  %v1705_v21 = vld [vmem:[#allocation2 + $0x20] sm:$0xff]  ;;  %v1709_v22 = vld [vmem:[#allocation2 + $0x18] sm:$0xff]  ;;  %v1712_v23 = vld [vmem:[#allocation2 + $0x10] sm:$0xff]  ;;  %v242_v7 = vand.u32 127, %v230_v5 }
  0x16   :  { %287 = vmatprep.subr.mxu1 %v1675_v11  ;;  %125 = vmatprep.subr.mxu0 %v48_v15  ;;  %v1716_v24 = vld [vmem:[#allocation2 + $0x8] sm:$0xff]  ;;  %v1720_v25 = vld [vmem:[#allocation2] sm:$0xff]  ;;  %vm1766_vm3 = vmand %vm255_vm1, %vm257_vm2 }
  0x17   :  { %288 = vmatpush1.msra.mxu1 %v1684_v14  ;;  %126 = vmatpush1.msra.mxu0 %v47_v17  ;;  %v55_v29 = vld [vmem:[%s2114_s2] sm:$0x3]  ;;  %s1603_s2 = smov 64   ;;  %v39_v48 = vld [vmem:[%s2112_s0 + $0x8] sm:$0xff]  ;;  %vm256_vm5 = vcmp.ge.s32.totalorder %v242_v7, 64  ;;  %vm258_vm6 = vcmp.lt.s32.totalorder %v242_v7, 96 }
  0x18   :  { %289 = vmatprep.subr.mxu1 %v1690_v16  ;;  %1448 = vmatmul.mubr.msk.f32.vlgmr.msra.gmra.mxu0 %vm67_vm0, %v38_v19  ;;  %v1763_v30 = vrot.slane %v55_v29, %v59_v28  ;;  %v1804_v57 = vrot.slane %v55_v29, %v63_v54  ;;  %vm1807_vm7 = vmand %vm256_vm5, %vm258_vm6  ;;  %v1347_v17 = vld [vmem:[%s2116_s4 + $0x8] sm:$0xff] }
  0x19   :  { %290 = vmatpush1.msra.mxu1 %v1696_v18  ;;  %164 = vmatprep.mubr.f32.mxu0 %v1602_v0 }
  0x1a   :  { %291 = vmatprep.subr.mxu1 %v1702_v20  ;;  %508 = vmatprep.subr.mxu0 %v1647_v1 }
  0x1b   :  { %292 = vmatpush1.msra.mxu1 %v1705_v21  ;;  %509 = vmatpush1.msra.mxu0 %v1649_v2 }
  0x1c   :  { %293 = vmatprep.subr.mxu1 %v1709_v22  ;;  %510 = vmatprep.subr.mxu0 %v1651_v3 }
  0x1d   :  { %294 = vmatpush1.msra.mxu1 %v1712_v23  ;;  %511 = vmatpush1.msra.mxu0 %v1654_v4 }
  0x1e   :  { %295 = vmatprep.subr.mxu1 %v1716_v24  ;;  %512 = vmatprep.subr.mxu0 %v1660_v6 }
  0x1f   :  { %296 = vmatpush1.msra.mxu1 %v1720_v25  ;;  %513 = vmatpush1.msra.mxu0 %v1669_v9 }
  0x20   :  { %330 = vmatmul.mubr.f32.vlgmr.msra.gmra.mxu1 %v1602_v0  ;;  %381 = vmatprep.subr.mxu1 %v1647_v1 }
  0x21   :  { %382 = vmatpush1.msra.mxu1 %v1649_v2  ;;  %429 = vmatprep.mubr.f32.mxu1 %v1602_v0 }
  0x22   :  { %383 = vmatprep.subr.mxu1 %v1651_v3  ;;  %514 = vmatprep.subr.mxu0 %v1675_v11 }
  0x23   :  { %384 = vmatpush1.msra.mxu1 %v1654_v4  ;;  %515 = vmatpush1.msra.mxu0 %v1684_v14 }
  0x24   :  { %385 = vmatprep.subr.mxu1 %v1660_v6  ;;  %516 = vmatprep.subr.mxu0 %v1690_v16 }
  0x25   :  { %386 = vmatpush1.msra.mxu1 %v1669_v9  ;;  %517 = vmatpush1.msra.mxu0 %v1696_v18 }
  0x26   :  { %387 = vmatprep.subr.mxu1 %v1675_v11  ;;  %518 = vmatprep.subr.mxu0 %v1702_v20 }
  0x27   :  { %388 = vmatpush1.msra.mxu1 %v1684_v14  ;;  %519 = vmatpush1.msra.mxu0 %v1705_v21 }
  0x28   :  { %389 = vmatprep.subr.mxu1 %v1690_v16  ;;  %520 = vmatprep.subr.mxu0 %v1709_v22 }
  0x29   :  { %390 = vmatpush1.msra.mxu1 %v1696_v18  ;;  %521 = vmatpush1.msra.mxu0 %v1712_v23 }
  0x2a   :  { %391 = vmatprep.subr.mxu1 %v1702_v20  ;;  %522 = vmatprep.subr.mxu0 %v1716_v24 }
  0x2b   :  { %392 = vmatpush1.msra.mxu1 %v1705_v21  ;;  %523 = vmatpush1.msra.mxu0 %v1720_v25 }
  0x2c   :  { %393 = vmatprep.subr.mxu1 %v1709_v22  ;;  %762 = vmatprep.subr.mxu0 %v1647_v1 }
  0x2d   :  { %394 = vmatpush1.msra.mxu1 %v1712_v23  ;;  %1449 = vmatmul.mubr.msk.f32.gmra.mxu0 %vm67_vm0, %v39_v48  ;;  %v46_v48 = vld [vmem:[%s2112_s0 + $0x40] sm:$0xff] }
  0x2e   :  { %395 = vmatprep.subr.mxu1 %v1716_v24  ;;  %170 = vmatprep.mubr.f32.mxu0 %v1602_v0 }
  0x2f   :  { %396 = vmatpush1.msra.mxu1 %v1720_v25 }
  0x30   :  { %635 = vmatprep.subr.mxu1 %v1647_v1 }
  0xd8   :  { %v161_v31 = vpop.f32.mrf.mxu0 }
  0xd9   :  { %v162_v33 = vadd.f32 %v161_v31, %v1763_v30 }
  0xda   :  { %v163_v32 = vpop.f32.mrf.mxu0 }
  0xe0   :  { %v331_v34 = vpop.f32.mrf.mxu1 }
  0xe1   :  { %v335_v35 = vadd.f32 %v331_v34, %v162_v33 }
  0xe2   :  { %v333_v36 = vpop.f32.mrf.mxu1 }
  0xe3   :  { %1491 = vtanh.f32 %v335_v35 }
  0xed   :  { %v166_v55 = vpop.f32.mrf.mxu0 }
  0xee   :  { %v167_v56 = vadd.f32 %v166_v55, %v1763_v30 }
  0xef   :  { %v168_v58 = vpop.f32.mrf.mxu0 }
  0xf0   :  { %v1492_v38 = vpop.eup %1491  ;;  %v169_v60 = vadd.f32 %v168_v58, %v1804_v57 }
  0xf1   :  { %v337_v39 = vmul.f32 0.5, %v1492_v38 }
  0xf3   :  { %v338_v41 = vadd.f32 0.5, %v337_v39  ;;  %v40_v39 = vld [vmem:[%s2112_s0 + $0x10] sm:$0xff] }
  0xf4   :  { %1450 = vmatmul.mubr.msk.f32.gmra.mxu0 %vm67_vm0, %v40_v39 }
  0xf5   :  { %v339_v42 = vsel %vm1766_vm3, %v1492_v38, %v338_v41  ;;  %176 = vmatprep.mubr.f32.mxu0 %v1602_v0  ;;  %v41_v41 = vld [vmem:[%s2112_s0 + $0x18] sm:$0xff] }
  0xf6   :  { %342 = vrot.lane.b32.xlu0 %v339_v42, %s1603_s2  ;;  %v340_v45 = vmul.f32 0.0, %v339_v42 }
  0xf8   :  { %1451 = vmatmul.mubr.msk.f32.gmra.mxu0 %vm67_vm0, %v41_v41 }
  0xf9   :  { %182 = vmatprep.mubr.f32.mxu0 %v1602_v0 }
 0x168   :  { %v343_v43 = vpop.permute.xlu0 %342 }
 0x169   :  { %v345_v44 = vmul.f32 %v343_v43, %v339_v42 }
 0x16b   :  { %347 = vrot.lane.b32.xlu0 %v345_v44, %s1604_s22 }
 0x1dd   :  { %v348_v46 = vpop.permute.xlu0 %347 }
 0x1de   :  { %v1774_v47 = vadd.f32 %v348_v46, %v340_v45  ;;  %v43_v45 = vld [vmem:[%s2112_s0 + $0x28] sm:$0xff]  ;;  %v44_v46 = vld [vmem:[%s2112_s0 + $0x30] sm:$0xff] }
 0x1e0   :  { %1493 = vtanh.f32 %v1774_v47 }
 0x1ed   :  { %v1494_v49 = vpop.eup %1493 }
 0x1ee   :  { %353 = vrot.lane.b32.xlu1 %v1494_v49, %s1603_s2 }
 0x260   :  { %v354_v50 = vpop.permute.xlu1 %353 }
 0x261   :  { %v356_v51 = vmul.f32 %v354_v50, %v339_v42  ;;  %v42_v42 = vld [vmem:[%s2112_s0 + $0x20] sm:$0xff] }
 0x262   :  { %1452 = vmatmul.mubr.msk.f32.gmra.mxu0 %vm67_vm0, %v42_v42 }
 0x263   :  { %358 = vrot.lane.b32.xlu1 %v356_v51, %s1604_s22  ;;  %188 = vmatprep.mubr.f32.mxu0 %v1602_v0 }
 0x266   :  { %1453 = vmatmul.mubr.msk.f32.gmra.mxu0 %vm67_vm0, %v43_v45 }
 0x267   :  { %194 = vmatprep.mubr.f32.mxu0 %v1602_v0 }
 0x26a   :  { %1454 = vmatmul.mubr.msk.f32.gmra.mxu0 %vm67_vm0, %v44_v46 }
 0x26b   :  { %200 = vmatprep.mubr.f32.mxu0 %v1602_v0 }
 0x2d5   :  { %v359_v52 = vpop.permute.xlu1 %358 }
 0x2d6   :  { %v361_v53 = vsel %vm67_vm0, %v359_v52, 0.0 }
 0x2d7   :  { %1457 = vmatmul.mubr.msk.f32.vlgmr.msra.gmra.mxu1 %vm261_vm4, %v361_v53  ;;  %v172_v53 = vpop.f32.mrf.mxu0 }
 0x2d8   :  { %636 = vmatpush1.msra.mxu1 %v1649_v2  ;;  %683 = vmatprep.mubr.f32.mxu1 %v1602_v0 }
 0x2d9   :  { %637 = vmatprep.subr.mxu1 %v1651_v3  ;;  %v174_v54 = vpop.f32.mrf.mxu0 }
 0x2da   :  { %638 = vmatpush1.msra.mxu1 %v1654_v4 }
 0x2db   :  { %639 = vmatprep.subr.mxu1 %v1660_v6  ;;  %v1865_v55 = vpop.f32.mrf.mxu0 }
 0x2dc   :  { %640 = vmatpush1.msra.mxu1 %v1669_v9 }
 0x2dd   :  { %641 = vmatprep.subr.mxu1 %v1675_v11 }
 0x2de   :  { %642 = vmatpush1.msra.mxu1 %v1684_v14 }
 0x2df   :  { %643 = vmatprep.subr.mxu1 %v1690_v16 }
 0x2e0   :  { %644 = vmatpush1.msra.mxu1 %v1696_v18 }
 0x2e1   :  { %645 = vmatprep.subr.mxu1 %v1702_v20 }
 0x2e2   :  { %646 = vmatpush1.msra.mxu1 %v1705_v21 }
 0x2e3   :  { %647 = vmatprep.subr.mxu1 %v1709_v22 }
 0x2e4   :  { %648 = vmatpush1.msra.mxu1 %v1712_v23 }
 0x2e5   :  { %649 = vmatprep.subr.mxu1 %v1716_v24 }
 0x2e6   :  { %650 = vmatpush1.msra.mxu1 %v1720_v25 }
 0x2e7   :  { %889 = vmatprep.subr.mxu1 %v1647_v1 }
 0x397   :  { %v431_v59 = vpop.f32.mrf.mxu1 }
 0x398   :  { %v436_v61 = vadd.f32 %v431_v59, %v167_v56  ;;  %v1867_v56 = vpop.f32.mrf.mxu0 }
 0x399   :  { %v433_v62 = vpop.f32.mrf.mxu1 }
 0x39a   :  { %1495 = vtanh.f32 %v436_v61  ;;  %v437_v63 = vadd.f32 %v433_v62, %v169_v60  ;;  %v1869_v58 = vpop.f32.mrf.mxu0 }
 0x39c   :  { %1497 = vtanh.f32 %v437_v63  ;;  %v1871_v59 = vpop.f32.mrf.mxu0 }
 0x39e   :  { %v1873_v60 = vpop.f32.mrf.mxu0 }
 0x3a0   :  { %v1875_v61 = vpop.f32.mrf.mxu0 }
 0x3a2   :  { %v1877_v62 = vpop.f32.mrf.mxu0 }
 0x3a4   :  { %v1879_v63 = vpop.f32.mrf.mxu0 }
 0x3a7   :  { %v1496_v8 = vpop.eup %1495 }
 0x3a8   :  { %v440_v10 = vmul.f32 0.5, %v1496_v8 }
 0x3a9   :  { %v1498_v12 = vpop.eup %1497 }
 0x3aa   :  { %v442_v13 = vadd.f32 0.5, %v440_v10  ;;  %v441_v15 = vmul.f32 0.5, %v1498_v12 }
 0x3ac   :  { %v444_v19 = vsel %vm1766_vm3, %v1496_v8, %v442_v13  ;;  %v443_v26 = vadd.f32 0.5, %v441_v15 }
 0x3ad   :  { %448 = vrot.lane.b32.xlu0 %v444_v19, %s1603_s2  ;;  %v446_v33 = vmul.f32 %v444_v19, %v1774_v47  ;;  %v45_v47 = vld [vmem:[%s2112_s0 + $0x38] sm:$0xff] }
 0x3ae   :  { %v445_v27 = vsel %vm1807_vm7, %v1498_v12, %v443_v26  ;;  %1455 = vmatmul.mubr.msk.f32.gmra.mxu0 %vm67_vm0, %v45_v47 }
 0x3af   :  { %465 = vrot.lane.b32.xlu1 %v445_v27, %s1603_s2  ;;  %v463_v36 = vmul.f32 0.0, %v445_v27  ;;  %206 = vmatprep.mubr.f32.mxu0 %v1602_v0 }
 0x3b2   :  { %1456 = vmatmul.mubr.msk.f32.gmra.mxu0 %vm67_vm0, %v46_v48 }
 0x3b3   :  { %556 = vmatprep.mubr.f32.mxu0 %v1602_v0 }
 0x41f   :  { %v449_v28 = vpop.permute.xlu0 %448 }
 0x420   :  { %v451_v29 = vmul.f32 %v449_v28, %v444_v19 }
 0x421   :  { %v466_v31 = vpop.permute.xlu1 %465 }
 0x422   :  { %v468_v32 = vmul.f32 %v466_v31, %v445_v27  ;;  %453 = vrot.lane.b32.xlu0 %v451_v29, %s1604_s22 }
 0x424   :  { %470 = vrot.lane.b32.xlu1 %v468_v32, %s1604_s22 }
 0x46e   :  { %v1881_v5 = vpop.f32.mrf.mxu0 }
 0x470   :  { %v1883_v7 = vpop.f32.mrf.mxu0 }
 0x472   :  { %v208_v8 = vpop.f32.mrf.mxu0 }
 0x474   :  { %v1904_v15 = vpop.f32.mrf.mxu0 }
 0x494   :  { %v454_v34 = vpop.permute.xlu0 %453 }
 0x495   :  { %v1820_v35 = vadd.f32 %v454_v34, %v446_v33 }
 0x496   :  { %v471_v37 = vpop.permute.xlu1 %470 }
 0x497   :  { %1499 = vtanh.f32 %v1820_v35  ;;  %v1823_v38 = vadd.f32 %v471_v37, %v463_v36 }
 0x499   :  { %1501 = vtanh.f32 %v1823_v38 }
 0x4a4   :  { %v1500_v43 = vpop.eup %1499 }
 0x4a5   :  { %459 = vrot.lane.b32.xlu0 %v1500_v43, %s1603_s2 }
 0x4a6   :  { %v1502_v44 = vpop.eup %1501 }
 0x4a7   :  { %476 = vrot.lane.b32.xlu1 %v1502_v44, %s1603_s2 }
 0x517   :  { %v460_v49 = vpop.permute.xlu0 %459 }
 0x518   :  { %v462_v50 = vmul.f32 %v460_v49, %v444_v19  ;;  %v173_v19 = vadd.f32 %v172_v53, %v1763_v30 }
 0x519   :  { %v477_v51 = vpop.permute.xlu1 %476 }
 0x51a   :  { %v479_v52 = vmul.f32 %v477_v51, %v445_v27  ;;  %481 = vrot.lane.b32.xlu0 %v462_v50, %s1604_s22  ;;  %v175_v27 = vadd.f32 %v174_v54, %v1804_v57 }
 0x51c   :  { %485 = vrot.lane.b32.xlu1 %v479_v52, %s1603_s2 }
 0x58c   :  { %v482_v10 = vpop.permute.xlu0 %481 }
 0x58e   :  { %v486_v12 = vpop.permute.xlu1 %485 }
 0x58f   :  { %v488_v13 = vsel %vm67_vm0, %v482_v10, %v486_v12 }
 0x590   :  { %1458 = vmatmul.mubr.msk.f32.vlgmr.msra.gmra.mxu0 %vm261_vm4, %v488_v13 }
 0x591   :  { %763 = vmatpush1.msra.mxu0 %v1649_v2  ;;  %810 = vmatprep.mubr.f32.mxu0 %v1602_v0 }
 0x592   :  { %764 = vmatprep.subr.mxu0 %v1651_v3 }
 0x593   :  { %765 = vmatpush1.msra.mxu0 %v1654_v4 }
 0x594   :  { %766 = vmatprep.subr.mxu0 %v1660_v6 }
 0x595   :  { %767 = vmatpush1.msra.mxu0 %v1669_v9 }
 0x596   :  { %768 = vmatprep.subr.mxu0 %v1675_v11 }
 0x597   :  { %769 = vmatpush1.msra.mxu0 %v1684_v14 }
 0x598   :  { %770 = vmatprep.subr.mxu0 %v1690_v16 }
 0x599   :  { %771 = vmatpush1.msra.mxu0 %v1696_v18 }
 0x59a   :  { %772 = vmatprep.subr.mxu0 %v1702_v20 }
 0x59b   :  { %773 = vmatpush1.msra.mxu0 %v1705_v21 }
 0x59c   :  { %774 = vmatprep.subr.mxu0 %v1709_v22 }
 0x59d   :  { %775 = vmatpush1.msra.mxu0 %v1712_v23 }
 0x59e   :  { %776 = vmatprep.subr.mxu0 %v1716_v24 }
 0x59f   :  { %777 = vmatpush1.msra.mxu0 %v1720_v25 }
 0x5a0   :  { %1016 = vmatprep.subr.mxu0 %v1647_v1 }
 0x650   :  { %v558_v26 = vpop.f32.mrf.mxu0 }
 0x651   :  { %v563_v28 = vadd.f32 %v558_v26, %v173_v19  ;;  %v179_v26 = vadd.f32 %v1865_v55, %v1763_v30 }
 0x652   :  { %v560_v29 = vpop.f32.mrf.mxu0 }
 0x653   :  { %1503 = vtanh.f32 %v563_v28  ;;  %v564_v31 = vadd.f32 %v560_v29, %v175_v27  ;;  %v181_v28 = vadd.f32 %v1867_v56, %v1804_v57 }
 0x655   :  { %1505 = vtanh.f32 %v564_v31 }
 0x660   :  { %v1504_v32 = vpop.eup %1503 }
 0x661   :  { %v567_v33 = vmul.f32 0.5, %v1504_v32 }
 0x662   :  { %v1506_v34 = vpop.eup %1505 }
 0x663   :  { %v569_v36 = vadd.f32 0.5, %v567_v33  ;;  %v568_v37 = vmul.f32 0.5, %v1506_v34 }
 0x665   :  { %v571_v39 = vsel %vm1766_vm3, %v1504_v32, %v569_v36  ;;  %v570_v41 = vadd.f32 0.5, %v568_v37 }
 0x666   :  { %575 = vrot.lane.b32.xlu0 %v571_v39, %s1603_s2  ;;  %v573_v47 = vmul.f32 %v571_v39, %v1820_v35 }
 0x667   :  { %v572_v42 = vsel %vm1807_vm7, %v1506_v34, %v570_v41 }
 0x668   :  { %592 = vrot.lane.b32.xlu1 %v572_v42, %s1603_s2  ;;  %v590_v50 = vmul.f32 %v572_v42, %v1823_v38 }
 0x6d8   :  { %v576_v43 = vpop.permute.xlu0 %575 }
 0x6d9   :  { %v578_v44 = vmul.f32 %v576_v43, %v571_v39 }
 0x6da   :  { %v593_v45 = vpop.permute.xlu1 %592 }
 0x6db   :  { %v595_v46 = vmul.f32 %v593_v45, %v572_v42  ;;  %580 = vrot.lane.b32.xlu0 %v578_v44, %s1604_s22 }
 0x6dd   :  { %597 = vrot.lane.b32.xlu1 %v595_v46, %s1604_s22 }
 0x74d   :  { %v581_v48 = vpop.permute.xlu0 %580 }
 0x74e   :  { %v583_v49 = vadd.f32 %v581_v48, %v573_v47 }
 0x74f   :  { %v598_v51 = vpop.permute.xlu1 %597 }
 0x750   :  { %1507 = vtanh.f32 %v583_v49  ;;  %v600_v52 = vadd.f32 %v598_v51, %v590_v50 }
 0x752   :  { %1509 = vtanh.f32 %v600_v52 }
 0x75d   :  { %v1508_v53 = vpop.eup %1507 }
 0x75e   :  { %586 = vrot.lane.b32.xlu0 %v1508_v53, %s1603_s2 }
 0x75f   :  { %v1510_v54 = vpop.eup %1509 }
 0x760   :  { %603 = vrot.lane.b32.xlu1 %v1510_v54, %s1603_s2 }
 0x7d0   :  { %v587_v8 = vpop.permute.xlu0 %586 }
 0x7d1   :  { %v589_v10 = vmul.f32 %v587_v8, %v571_v39 }
 0x7d2   :  { %v604_v12 = vpop.permute.xlu1 %603 }
 0x7d3   :  { %v606_v13 = vmul.f32 %v604_v12, %v572_v42  ;;  %608 = vrot.lane.b32.xlu0 %v589_v10, %s1604_s22 }
 0x7d5   :  { %612 = vrot.lane.b32.xlu1 %v606_v13, %s1603_s2 }
 0x845   :  { %v609_v35 = vpop.permute.xlu0 %608 }
 0x847   :  { %v613_v38 = vpop.permute.xlu1 %612 }
 0x848   :  { %v615_v19 = vsel %vm67_vm0, %v609_v35, %v613_v38 }
 0x849   :  { %1459 = vmatmul.mubr.msk.f32.vlgmr.msra.gmra.mxu1 %vm261_vm4, %v615_v19  ;;  %v185_v19 = vadd.f32 %v1869_v58, %v1763_v30 }
 0x84a   :  { %890 = vmatpush1.msra.mxu1 %v1649_v2  ;;  %937 = vmatprep.mubr.f32.mxu1 %v1602_v0 }
 0x84b   :  { %891 = vmatprep.subr.mxu1 %v1651_v3 }
 0x84c   :  { %892 = vmatpush1.msra.mxu1 %v1654_v4 }
 0x84d   :  { %893 = vmatprep.subr.mxu1 %v1660_v6 }
 0x84e   :  { %894 = vmatpush1.msra.mxu1 %v1669_v9 }
 0x84f   :  { %895 = vmatprep.subr.mxu1 %v1675_v11 }
 0x850   :  { %896 = vmatpush1.msra.mxu1 %v1684_v14 }
 0x851   :  { %897 = vmatprep.subr.mxu1 %v1690_v16 }
 0x852   :  { %898 = vmatpush1.msra.mxu1 %v1696_v18 }
 0x853   :  { %899 = vmatprep.subr.mxu1 %v1702_v20 }
 0x854   :  { %900 = vmatpush1.msra.mxu1 %v1705_v21 }
 0x855   :  { %901 = vmatprep.subr.mxu1 %v1709_v22 }
 0x856   :  { %902 = vmatpush1.msra.mxu1 %v1712_v23 }
 0x857   :  { %903 = vmatprep.subr.mxu1 %v1716_v24 }
 0x858   :  { %904 = vmatpush1.msra.mxu1 %v1720_v25 }
 0x859   :  { %1143 = vmatprep.subr.mxu1 %v1647_v1 }
 0x909   :  { %v685_v27 = vpop.f32.mrf.mxu1 }
 0x90a   :  { %v690_v29 = vadd.f32 %v685_v27, %v179_v26  ;;  %v187_v27 = vadd.f32 %v1871_v59, %v1804_v57 }
 0x90b   :  { %v687_v31 = vpop.f32.mrf.mxu1 }
 0x90c   :  { %1511 = vtanh.f32 %v690_v29  ;;  %v691_v32 = vadd.f32 %v687_v31, %v181_v28 }
 0x90e   :  { %1513 = vtanh.f32 %v691_v32 }
 0x919   :  { %v1512_v33 = vpop.eup %1511 }
 0x91a   :  { %v694_v34 = vmul.f32 0.5, %v1512_v33 }
 0x91b   :  { %v1514_v36 = vpop.eup %1513 }
 0x91c   :  { %v696_v37 = vadd.f32 0.5, %v694_v34  ;;  %v695_v39 = vmul.f32 0.5, %v1514_v36 }
 0x91e   :  { %v698_v41 = vsel %vm1766_vm3, %v1512_v33, %v696_v37  ;;  %v697_v42 = vadd.f32 0.5, %v695_v39 }
 0x91f   :  { %702 = vrot.lane.b32.xlu0 %v698_v41, %s1603_s2  ;;  %v700_v46 = vmul.f32 %v698_v41, %v583_v49 }
 0x920   :  { %v699_v55 = vsel %vm1807_vm7, %v1514_v36, %v697_v42 }
 0x921   :  { %719 = vrot.lane.b32.xlu1 %v699_v55, %s1603_s2  ;;  %v717_v50 = vmul.f32 %v699_v55, %v600_v52 }
 0x991   :  { %v703_v56 = vpop.permute.xlu0 %702 }
 0x992   :  { %v705_v43 = vmul.f32 %v703_v56, %v698_v41 }
 0x993   :  { %v720_v44 = vpop.permute.xlu1 %719 }
 0x994   :  { %v722_v45 = vmul.f32 %v720_v44, %v699_v55  ;;  %707 = vrot.lane.b32.xlu0 %v705_v43, %s1604_s22 }
 0x996   :  { %724 = vrot.lane.b32.xlu1 %v722_v45, %s1604_s22 }
 0xa06   :  { %v708_v47 = vpop.permute.xlu0 %707 }
 0xa07   :  { %v710_v48 = vadd.f32 %v708_v47, %v700_v46 }
 0xa08   :  { %v725_v51 = vpop.permute.xlu1 %724 }
 0xa09   :  { %1515 = vtanh.f32 %v710_v48  ;;  %v727_v53 = vadd.f32 %v725_v51, %v717_v50 }
 0xa0b   :  { %1517 = vtanh.f32 %v727_v53 }
 0xa16   :  { %v1516_v54 = vpop.eup %1515 }
 0xa17   :  { %713 = vrot.lane.b32.xlu0 %v1516_v54, %s1603_s2 }
 0xa18   :  { %v1518_v8 = vpop.eup %1517 }
 0xa19   :  { %730 = vrot.lane.b32.xlu1 %v1518_v8, %s1603_s2 }
 0xa89   :  { %v714_v10 = vpop.permute.xlu0 %713 }
 0xa8a   :  { %v716_v12 = vmul.f32 %v714_v10, %v698_v41 }
 0xa8b   :  { %v731_v13 = vpop.permute.xlu1 %730 }
 0xa8c   :  { %v733_v35 = vmul.f32 %v731_v13, %v699_v55  ;;  %735 = vrot.lane.b32.xlu0 %v716_v12, %s1604_s22 }
 0xa8e   :  { %739 = vrot.lane.b32.xlu1 %v733_v35, %s1603_s2  ;;  %v191_v35 = vadd.f32 %v1873_v60, %v1763_v30 }
 0xafe   :  { %v736_v49 = vpop.permute.xlu0 %735 }
 0xb00   :  { %v740_v52 = vpop.permute.xlu1 %739 }
 0xb01   :  { %v742_v38 = vsel %vm67_vm0, %v736_v49, %v740_v52  ;;  %v193_v52 = vadd.f32 %v1875_v61, %v1804_v57 }
 0xb02   :  { %1460 = vmatmul.mubr.msk.f32.vlgmr.msra.gmra.mxu0 %vm261_vm4, %v742_v38 }
 0xb03   :  { %1017 = vmatpush1.msra.mxu0 %v1649_v2  ;;  %1064 = vmatprep.mubr.f32.mxu0 %v1602_v0 }
 0xb04   :  { %1018 = vmatprep.subr.mxu0 %v1651_v3 }
 0xb05   :  { %1019 = vmatpush1.msra.mxu0 %v1654_v4 }
 0xb06   :  { %1020 = vmatprep.subr.mxu0 %v1660_v6 }
 0xb07   :  { %1021 = vmatpush1.msra.mxu0 %v1669_v9 }
 0xb08   :  { %1022 = vmatprep.subr.mxu0 %v1675_v11 }
 0xb09   :  { %1023 = vmatpush1.msra.mxu0 %v1684_v14 }
 0xb0a   :  { %1024 = vmatprep.subr.mxu0 %v1690_v16 }
 0xb0b   :  { %1025 = vmatpush1.msra.mxu0 %v1696_v18 }
 0xb0c   :  { %1026 = vmatprep.subr.mxu0 %v1702_v20 }
 0xb0d   :  { %1027 = vmatpush1.msra.mxu0 %v1705_v21 }
 0xb0e   :  { %1028 = vmatprep.subr.mxu0 %v1709_v22 }
 0xb0f   :  { %1029 = vmatpush1.msra.mxu0 %v1712_v23 }
 0xb10   :  { %1030 = vmatprep.subr.mxu0 %v1716_v24 }
 0xb11   :  { %1031 = vmatpush1.msra.mxu0 %v1720_v25 }
 0xb12   :  { %1270 = vmatprep.subr.mxu0 %v1647_v1 }
 0xbc2   :  { %v812_v26 = vpop.f32.mrf.mxu0 }
 0xbc3   :  { %v817_v28 = vadd.f32 %v812_v26, %v185_v19 }
 0xbc4   :  { %v814_v29 = vpop.f32.mrf.mxu0 }
 0xbc5   :  { %1519 = vtanh.f32 %v817_v28  ;;  %v818_v31 = vadd.f32 %v814_v29, %v187_v27 }
 0xbc7   :  { %1521 = vtanh.f32 %v818_v31 }
 0xbd2   :  { %v1520_v32 = vpop.eup %1519 }
 0xbd3   :  { %v821_v33 = vmul.f32 0.5, %v1520_v32 }
 0xbd4   :  { %v1522_v34 = vpop.eup %1521 }
 0xbd5   :  { %v823_v36 = vadd.f32 0.5, %v821_v33  ;;  %v822_v37 = vmul.f32 0.5, %v1522_v34 }
 0xbd7   :  { %v825_v1 = vsel %vm1766_vm3, %v1520_v32, %v823_v36  ;;  %v824_v39 = vadd.f32 0.5, %v822_v37 }
 0xbd8   :  { %829 = vrot.lane.b32.xlu0 %v825_v1, %s1603_s2  ;;  %v827_v56 = vmul.f32 %v825_v1, %v710_v48 }
 0xbd9   :  { %v826_v58 = vsel %vm1807_vm7, %v1522_v34, %v824_v39 }
 0xbda   :  { %846 = vrot.lane.b32.xlu1 %v826_v58, %s1603_s2  ;;  %v844_v45 = vmul.f32 %v826_v58, %v727_v53 }
 0xc4a   :  { %v830_v59 = vpop.permute.xlu0 %829 }
 0xc4b   :  { %v832_v41 = vmul.f32 %v830_v59, %v825_v1 }
 0xc4c   :  { %v847_v42 = vpop.permute.xlu1 %846 }
 0xc4d   :  { %v849_v55 = vmul.f32 %v847_v42, %v826_v58  ;;  %834 = vrot.lane.b32.xlu0 %v832_v41, %s1604_s22 }
 0xc4f   :  { %851 = vrot.lane.b32.xlu1 %v849_v55, %s1604_s22 }
 0xcbf   :  { %v835_v43 = vpop.permute.xlu0 %834 }
 0xcc0   :  { %v837_v44 = vadd.f32 %v835_v43, %v827_v56 }
 0xcc1   :  { %v852_v46 = vpop.permute.xlu1 %851 }
 0xcc2   :  { %1523 = vtanh.f32 %v837_v44  ;;  %v854_v47 = vadd.f32 %v852_v46, %v844_v45 }
 0xcc4   :  { %1525 = vtanh.f32 %v854_v47 }
 0xccf   :  { %v1524_v50 = vpop.eup %1523 }
 0xcd0   :  { %840 = vrot.lane.b32.xlu0 %v1524_v50, %s1603_s2 }
 0xcd1   :  { %v1526_v51 = vpop.eup %1525 }
 0xcd2   :  { %857 = vrot.lane.b32.xlu1 %v1526_v51, %s1603_s2 }
 0xd42   :  { %v841_v54 = vpop.permute.xlu0 %840 }
 0xd43   :  { %v843_v8 = vmul.f32 %v841_v54, %v825_v1 }
 0xd44   :  { %v858_v10 = vpop.permute.xlu1 %857 }
 0xd45   :  { %v860_v12 = vmul.f32 %v858_v10, %v826_v58  ;;  %862 = vrot.lane.b32.xlu0 %v843_v8, %s1604_s22 }
 0xd47   :  { %866 = vrot.lane.b32.xlu1 %v860_v12, %s1603_s2 }
 0xdb7   :  { %v863_v48 = vpop.permute.xlu0 %862 }
 0xdb9   :  { %v867_v53 = vpop.permute.xlu1 %866 }
 0xdba   :  { %v869_v13 = vsel %vm67_vm0, %v863_v48, %v867_v53 }
 0xdbb   :  { %1461 = vmatmul.mubr.msk.f32.vlgmr.msra.gmra.mxu1 %vm261_vm4, %v869_v13 }
 0xdbc   :  { %1144 = vmatpush1.msra.mxu1 %v1649_v2  ;;  %1191 = vmatprep.mubr.f32.mxu1 %v1602_v0 }
 0xdbd   :  { %1145 = vmatprep.subr.mxu1 %v1651_v3 }
 0xdbe   :  { %1146 = vmatpush1.msra.mxu1 %v1654_v4 }
 0xdbf   :  { %1147 = vmatprep.subr.mxu1 %v1660_v6 }
 0xdc0   :  { %1148 = vmatpush1.msra.mxu1 %v1669_v9 }
 0xdc1   :  { %1149 = vmatprep.subr.mxu1 %v1675_v11 }
 0xdc2   :  { %1150 = vmatpush1.msra.mxu1 %v1684_v14 }
 0xdc3   :  { %1151 = vmatprep.subr.mxu1 %v1690_v16 }
 0xdc4   :  { %1152 = vmatpush1.msra.mxu1 %v1696_v18 }
 0xdc5   :  { %1153 = vmatprep.subr.mxu1 %v1702_v20 }
 0xdc6   :  { %1154 = vmatpush1.msra.mxu1 %v1705_v21 }
 0xdc7   :  { %1155 = vmatprep.subr.mxu1 %v1709_v22 }
 0xdc8   :  { %1156 = vmatpush1.msra.mxu1 %v1712_v23 }
 0xdc9   :  { %1157 = vmatprep.subr.mxu1 %v1716_v24 }
 0xdca   :  { %1158 = vmatpush1.msra.mxu1 %v1720_v25 }
 0xdcb   :  { %1472 = vmatprep.subr.mxu1 %v1602_v0 }
 0xe7b   :  { %v939_v49 = vpop.f32.mrf.mxu1 }
 0xe7c   :  { %v944_v38 = vadd.f32 %v939_v49, %v191_v35 }
 0xe7d   :  { %v941_v19 = vpop.f32.mrf.mxu1 }
 0xe7e   :  { %1527 = vtanh.f32 %v944_v38  ;;  %v945_v26 = vadd.f32 %v941_v19, %v193_v52 }
 0xe80   :  { %1529 = vtanh.f32 %v945_v26 }
 0xe8b   :  { %v1528_v27 = vpop.eup %1527 }
 0xe8c   :  { %v948_v28 = vmul.f32 0.5, %v1528_v27 }
 0xe8d   :  { %v1530_v29 = vpop.eup %1529 }
 0xe8e   :  { %v950_v31 = vadd.f32 0.5, %v948_v28  ;;  %v949_v32 = vmul.f32 0.5, %v1530_v29 }
 0xe90   :  { %v952_v33 = vsel %vm1766_vm3, %v1528_v27, %v950_v31  ;;  %v951_v34 = vadd.f32 0.5, %v949_v32  ;;  %v203_v32 = vadd.f32 %v1881_v5, %v1763_v30 }
 0xe91   :  { %956 = vrot.lane.b32.xlu0 %v952_v33, %s1603_s2  ;;  %v954_v39 = vmul.f32 %v952_v33, %v837_v44 }
 0xe92   :  { %v953_v60 = vsel %vm1807_vm7, %v1530_v29, %v951_v34  ;;  %v205_v34 = vadd.f32 %v1883_v7, %v1804_v57 }
 0xe93   :  { %973 = vrot.lane.b32.xlu1 %v953_v60, %s1603_s2  ;;  %v971_v41 = vmul.f32 %v953_v60, %v854_v47 }
 0xf03   :  { %v957_v61 = vpop.permute.xlu0 %956 }
 0xf04   :  { %v959_v36 = vmul.f32 %v957_v61, %v952_v33 }
 0xf05   :  { %v974_v37 = vpop.permute.xlu1 %973 }
 0xf06   :  { %v976_v1 = vmul.f32 %v974_v37, %v953_v60  ;;  %961 = vrot.lane.b32.xlu0 %v959_v36, %s1604_s22 }
 0xf08   :  { %978 = vrot.lane.b32.xlu1 %v976_v1, %s1604_s22 }
 0xf78   :  { %v962_v58 = vpop.permute.xlu0 %961 }
 0xf79   :  { %v964_v59 = vadd.f32 %v962_v58, %v954_v39 }
 0xf7a   :  { %v979_v42 = vpop.permute.xlu1 %978 }
 0xf7b   :  { %1531 = vtanh.f32 %v964_v59  ;;  %v981_v55 = vadd.f32 %v979_v42, %v971_v41 }
 0xf7d   :  { %1533 = vtanh.f32 %v981_v55 }
 0xf88   :  { %v1532_v56 = vpop.eup %1531 }
 0xf89   :  { %967 = vrot.lane.b32.xlu0 %v1532_v56, %s1603_s2 }
 0xf8a   :  { %v1534_v43 = vpop.eup %1533 }
 0xf8b   :  { %984 = vrot.lane.b32.xlu1 %v1534_v43, %s1603_s2 }
 0xffb   :  { %v968_v45 = vpop.permute.xlu0 %967 }
 0xffc   :  { %v970_v46 = vmul.f32 %v968_v45, %v952_v33 }
 0xffd   :  { %v985_v50 = vpop.permute.xlu1 %984 }
 0xffe   :  { %v987_v51 = vmul.f32 %v985_v50, %v953_v60  ;;  %989 = vrot.lane.b32.xlu0 %v970_v46, %s1604_s22 }
0x1000   :  { %993 = vrot.lane.b32.xlu1 %v987_v51, %s1603_s2 }
0x1070   :  { %v990_v44 = vpop.permute.xlu0 %989 }
0x1072   :  { %v994_v47 = vpop.permute.xlu1 %993 }
0x1073   :  { %v996_v54 = vsel %vm67_vm0, %v990_v44, %v994_v47 }
0x1074   :  { %1462 = vmatmul.mubr.msk.f32.vlgmr.msra.gmra.mxu0 %vm261_vm4, %v996_v54 }
0x1075   :  { %1271 = vmatpush1.msra.mxu0 %v1649_v2  ;;  %1318 = vmatprep.mubr.f32.mxu0 %v1602_v0  ;;  %v197_v2 = vadd.f32 %v1877_v62, %v1763_v30 }
0x1076   :  { %1272 = vmatprep.subr.mxu0 %v1651_v3 }
0x1077   :  { %1273 = vmatpush1.msra.mxu0 %v1654_v4  ;;  %v199_v4 = vadd.f32 %v1879_v63, %v1804_v57 }
0x1078   :  { %1274 = vmatprep.subr.mxu0 %v1660_v6 }
0x1079   :  { %1275 = vmatpush1.msra.mxu0 %v1669_v9 }
0x107a   :  { %1276 = vmatprep.subr.mxu0 %v1675_v11 }
0x107b   :  { %1277 = vmatpush1.msra.mxu0 %v1684_v14 }
0x107c   :  { %1278 = vmatprep.subr.mxu0 %v1690_v16 }
0x107d   :  { %1279 = vmatpush1.msra.mxu0 %v1696_v18 }
0x107e   :  { %1280 = vmatprep.subr.mxu0 %v1702_v20 }
0x107f   :  { %1281 = vmatpush1.msra.mxu0 %v1705_v21 }
0x1080   :  { %1282 = vmatprep.subr.mxu0 %v1709_v22 }
0x1081   :  { %1283 = vmatpush1.msra.mxu0 %v1712_v23 }
0x1082   :  { %1284 = vmatprep.subr.mxu0 %v1716_v24 }
0x1083   :  { %1285 = vmatpush1.msra.mxu0 %v1720_v25 }
0x1134   :  { %v1066_v3 = vpop.f32.mrf.mxu0 }
0x1135   :  { %v1071_v6 = vadd.f32 %v1066_v3, %v197_v2 }
0x1136   :  { %v1068_v9 = vpop.f32.mrf.mxu0 }
0x1137   :  { %1535 = vtanh.f32 %v1071_v6  ;;  %v1072_v11 = vadd.f32 %v1068_v9, %v199_v4 }
0x1139   :  { %1537 = vtanh.f32 %v1072_v11 }
0x1144   :  { %v1536_v14 = vpop.eup %1535 }
0x1145   :  { %v1075_v16 = vmul.f32 0.5, %v1536_v14 }
0x1146   :  { %v1538_v18 = vpop.eup %1537 }
0x1147   :  { %v1077_v20 = vadd.f32 0.5, %v1075_v16  ;;  %v1076_v21 = vmul.f32 0.5, %v1538_v18  ;;  %v210_v16 = vadd.f32 %v1904_v15, %v1804_v57  ;;  %v1349_v57 = vld [vmem:[%s2116_s4 + $0x18] sm:$0xff]  ;;  %v1348_v15 = vld [vmem:[%s2116_s4 + $0x10] sm:$0xff] }
0x1149   :  { %v1079_v22 = vsel %vm1766_vm3, %v1536_v14, %v1077_v20  ;;  %v1078_v23 = vadd.f32 0.5, %v1076_v21 }
0x114a   :  { %1083 = vrot.lane.b32.xlu0 %v1079_v22, %s1603_s2  ;;  %v1081_v10 = vmul.f32 %v1079_v22, %v964_v59 }
0x114b   :  { %v1080_v24 = vsel %vm1807_vm7, %v1538_v18, %v1078_v23 }
0x114c   :  { %1100 = vrot.lane.b32.xlu1 %v1080_v24, %s1603_s2  ;;  %v1098_v53 = vmul.f32 %v1080_v24, %v981_v55 }
0x11bc   :  { %v1084_v25 = vpop.permute.xlu0 %1083 }
0x11bd   :  { %v1086_v62 = vmul.f32 %v1084_v25, %v1079_v22 }
0x11be   :  { %v1101_v63 = vpop.permute.xlu1 %1100 }
0x11bf   :  { %v1103_v8 = vmul.f32 %v1101_v63, %v1080_v24  ;;  %1088 = vrot.lane.b32.xlu0 %v1086_v62, %s1604_s22 }
0x11c1   :  { %1105 = vrot.lane.b32.xlu1 %v1103_v8, %s1604_s22 }
0x1231   :  { %v1089_v12 = vpop.permute.xlu0 %1088 }
0x1232   :  { %v1091_v48 = vadd.f32 %v1089_v12, %v1081_v10  ;;  %v1346_v12 = vld [vmem:[%s2116_s4] sm:$0xff]  ;;  %s1439_s4 = sshll.u32 %s1606_s23, 4  ;;  %s1440_s4 = int_to_ptr.vmem [resolvable:$true] %s1439_s4 }
0x1233   :  { %v1106_v13 = vpop.permute.xlu1 %1105  ;;  %s1575_s24 = scalar_lea.vmem %s1440_s4, 128  ;;  %p1580_p6 = scmp.lt.s32.totalorder %s1440_s4, %s1440_s4 }
0x1234   :  { %1539 = vtanh.f32 %v1091_v48  ;;  %v1108_v35 = vadd.f32 %v1106_v13, %v1098_v53  ;;  %p1576_p5 = scmp.ne.s32.totalorder %s1440_s4, %s1575_s24  ;;  %p1581_p7 = scmp.lt.s32.totalorder %s1575_s24, %s1575_s24 }
0x1236   :  { %1541 = vtanh.f32 %v1108_v35  ;;  %p1582_p8 = por %p1581_p7, %p1580_p6 }
0x1238   :  { %p1583_p9 = pnand %p1582_p8, %p1576_p5 }
0x1241   :  { %v1540_v49 = vpop.eup %1539 }
0x1242   :  { %1094 = vrot.lane.b32.xlu0 %v1540_v49, %s1603_s2  ;;  %v1465_v49 = vld [vmem:[%s2117_s5] ss:$0 sm:$0xff] }
0x1243   :  { %v1542_v52 = vpop.eup %1541 }
0x1244   :  { %1111 = vrot.lane.b32.xlu1 %v1542_v52, %s1603_s2 }
0x12b4   :  { %v1095_v38 = vpop.permute.xlu0 %1094 }
0x12b5   :  { %v1097_v19 = vmul.f32 %v1095_v38, %v1079_v22 }
0x12b6   :  { %v1112_v26 = vpop.permute.xlu1 %1111 }
0x12b7   :  { %v1114_v27 = vmul.f32 %v1112_v26, %v1080_v24  ;;  %1116 = vrot.lane.b32.xlu0 %v1097_v19, %s1604_s22 }
0x12b9   :  { %1120 = vrot.lane.b32.xlu1 %v1114_v27, %s1603_s2 }
0x1329   :  { %v1117_v28 = vpop.permute.xlu0 %1116 }
0x132b   :  { %v1121_v29 = vpop.permute.xlu1 %1120 }
0x132c   :  { %v1123_v31 = vsel %vm67_vm0, %v1117_v28, %v1121_v29 }
0x132d   :  { %1463 = vmatmul.mubr.msk.f32.vlgmr.msra.gmra.mxu1 %vm261_vm4, %v1123_v31 }
0x132e   :  { %1473 = vmatpush3.msra.mxu1 %v1349_v57  ;;  %1480 = vmatprep.mubr.msk.f32.mxu1 %vm1605_vm8, %v1602_v0 }
0x132f   :  { %1474 = vmatprep.subr.mxu1 %v1602_v0 }
0x1330   :  { %1475 = vmatpush3.msra.mxu1 %v1348_v15 }
0x1331   :  { %1476 = vmatprep.subr.mxu1 %v1602_v0 }
0x1332   :  { %1477 = vmatpush3.msra.mxu1 %v1347_v17 }
0x1333   :  { %1478 = vmatprep.subr.mxu1 %v1602_v0 }
0x1334   :  { %1479 = vmatpush3.msra.mxu1 %v1346_v12 }
0x13ed   :  { %v1193_v33 = vpop.f32.mrf.mxu1 }
0x13ee   :  { %v1198_v60 = vadd.f32 %v1193_v33, %v203_v32 }
0x13ef   :  { %v1195_v61 = vpop.f32.mrf.mxu1 }
0x13f0   :  { %1543 = vtanh.f32 %v1198_v60  ;;  %v1199_v36 = vadd.f32 %v1195_v61, %v205_v34 }
0x13f2   :  { %1545 = vtanh.f32 %v1199_v36 }
0x13fd   :  { %v1544_v37 = vpop.eup %1543 }
0x13fe   :  { %v1202_v1 = vmul.f32 0.5, %v1544_v37 }
0x13ff   :  { %v1546_v39 = vpop.eup %1545 }
0x1400   :  { %v1204_v58 = vadd.f32 0.5, %v1202_v1  ;;  %v1203_v59 = vmul.f32 0.5, %v1546_v39 }
0x1402   :  { %v1206_v41 = vsel %vm1766_vm3, %v1544_v37, %v1204_v58  ;;  %v1205_v42 = vadd.f32 0.5, %v1203_v59 }
0x1403   :  { %1210 = vrot.lane.b32.xlu0 %v1206_v41, %s1603_s2  ;;  %v1208_v43 = vmul.f32 %v1206_v41, %v1091_v48 }
0x1404   :  { %v1207_v30 = vsel %vm1807_vm7, %v1546_v39, %v1205_v42 }
0x1405   :  { %1227 = vrot.lane.b32.xlu1 %v1207_v30, %s1603_s2  ;;  %v1225_v46 = vmul.f32 %v1207_v30, %v1108_v35 }
0x1475   :  { %v1211_v5 = vpop.permute.xlu0 %1210 }
0x1476   :  { %v1213_v7 = vmul.f32 %v1211_v5, %v1206_v41 }
0x1477   :  { %v1228_v55 = vpop.permute.xlu1 %1227 }
0x1478   :  { %v1230_v56 = vmul.f32 %v1228_v55, %v1207_v30  ;;  %1215 = vrot.lane.b32.xlu0 %v1213_v7, %s1604_s22 }
0x147a   :  { %1232 = vrot.lane.b32.xlu1 %v1230_v56, %s1604_s22 }
0x14ea   :  { %v1216_v45 = vpop.permute.xlu0 %1215 }
0x14eb   :  { %v1218_v40 = vadd.f32 %v1216_v45, %v1208_v43 }
0x14ec   :  { %v1233_v50 = vpop.permute.xlu1 %1232 }
0x14ed   :  { %1547 = vtanh.f32 %v1218_v40  ;;  %v1235_v51 = vadd.f32 %v1233_v50, %v1225_v46 }
0x14ef   :  { %1549 = vtanh.f32 %v1235_v51 }
0x14fa   :  { %v1548_v44 = vpop.eup %1547 }
0x14fb   :  { %1221 = vrot.lane.b32.xlu0 %v1548_v44, %s1603_s2 }
0x14fc   :  { %v1550_v47 = vpop.eup %1549 }
0x14fd   :  { %1238 = vrot.lane.b32.xlu1 %v1550_v47, %s1603_s2 }
0x156d   :  { %v1222_v54 = vpop.permute.xlu0 %1221 }
0x156e   :  { %v1224_v2 = vmul.f32 %v1222_v54, %v1206_v41 }
0x156f   :  { %v1239_v3 = vpop.permute.xlu1 %1238 }
0x1570   :  { %v1241_v4 = vmul.f32 %v1239_v3, %v1207_v30  ;;  %1243 = vrot.lane.b32.xlu0 %v1224_v2, %s1604_s22 }
0x1572   :  { %1247 = vrot.lane.b32.xlu1 %v1241_v4, %s1603_s2 }
0x15e2   :  { %v1244_v6 = vpop.permute.xlu0 %1243 }
0x15e4   :  { %v1248_v9 = vpop.permute.xlu1 %1247 }
0x15e5   :  { %v1250_v11 = vsel %vm67_vm0, %v1244_v6, %v1248_v9 }
0x15e6   :  { %1464 = vmatmul.mubr.msk.f32.vlgmr.msra.gmra.mxu0 %vm261_vm4, %v1250_v11 }
0x16a6   :  { %v1320_v14 = vpop.f32.mrf.mxu0 }
0x16a8   :  { %v1321_v18 = vpop.f32.mrf.mxu0 }
0x16a9   :  { %v1324_v20 = vadd.f32 %v1321_v18, %v210_v16 }
0x16ab   :  { %1551 = vtanh.f32 %v1324_v20 }
0x16b8   :  { %v1552_v21 = vpop.eup %1551 }
0x16b9   :  { %v1326_v22 = vmul.f32 0.5, %v1552_v21 }
0x16bb   :  { %v1327_v23 = vadd.f32 0.5, %v1326_v22 }
0x16bd   :  { %v1328_v24 = vsel %vm1807_vm7, %v1552_v21, %v1327_v23 }
0x16be   :  { %1331 = vrot.lane.b32.xlu0 %v1328_v24, %s1603_s2  ;;  %v1329_v63 = vmul.f32 %v1328_v24, %v1235_v51 }
0x1730   :  { %v1332_v25 = vpop.permute.xlu0 %1331 }
0x1731   :  { %v1334_v62 = vmul.f32 %v1332_v25, %v1328_v24 }
0x1733   :  { %1336 = vrot.lane.b32.xlu1 %v1334_v62, %s1604_s22 }
0x17a5   :  { %v1337_v8 = vpop.permute.xlu1 %1336 }
0x17a6   :  { %v1339_v10 = vadd.f32 %v1337_v8, %v1329_v63 }
0x17a8   :  { %1553 = vtanh.f32 %v1339_v10 }
0x17b5   :  { %v1554_v48 = vpop.eup %1553 }
0x17b6   :  { %1342 = vrot.lane.b32.xlu0 %v1554_v48, %s1603_s2 }
0x1828   :  { %v1343_v53 = vpop.permute.xlu0 %1342 }
0x1829   :  { %v1345_v13 = vmul.f32 %v1343_v53, %v1328_v24 }
0x182b   :  { %1358 = vrot.lane.b32.xlu1 %v1345_v13, %s1604_s22 }
0x189d   :  { %v1359_v35 = vpop.permute.xlu1 %1358 }
0x189e   :  { %1481 = vmatmul.mubr.msk.f32.vlgmr.msra.gmra.mxu1 %vm67_vm0, %v1359_v35 }
0x195e   :  { %v1428_v52 = vpop.f32.mrf.mxu1 }
0x195f   :  { %v1429_v38 = vadd.f32 %v1465_v49, %v1428_v52 }
0x1960   :  { %v1482_v0 = vpop.f32.mrf.mxu1 }
0x1961   :  { %1432 = vst [vmem:[#allocation5] sm:$0xff] %v1429_v38 }
0x1962   :  { %1586 = shalt.err (!%p1583_p9)
}
0x1963   :  { %1442 = dma.vmem_to_hbm [thread:$0]  %s1440_s4, 128, %s2118_s6, [#allocation4]  }
0x1964   :  { %1597 = dma.done.wait [#allocation4], 128  }
0x1965   :  { %1598 = vsyncadd [#allocation4], 4294967168 }
0x1966   :  { %1446 = vsyncpa [#allocation3], 1 }
0x1967   :  { %1447 = vsyncpa [#allocation4], 1 }

</bundles_post_ra>
